<compile_context>
chip_gen: v6e
topology: v6e:2x2x1
jax: 0.10.0
libtpu: 0.0.40
codegen_flags: <defaults>
</compile_context>

<pallas_src>
import functools

import jax
import jax.numpy as jnp
from jax.experimental import pallas as pl
from jax.experimental.pallas import tpu as pltpu

_EPS = 1e-5


# --------------------------------------------------------------------------- #
# Kernel: one (image, row-tile) step of a 3x3 "same" conv + BN partial stats.  #
# Optionally applies the previous layer's folded BN scale/bias + ReLU to its   #
# padded input slab before extracting patches (conv2 path).                    #
# --------------------------------------------------------------------------- #
def _conv3x3_stats_kernel(apply_input_act, emit_padded_out, use_im2col,
                          TH, H, W, mxu_dtype,
                          x_ref, w_ref, s_ref, b_ref, y_ref, st_ref):
    # x_ref : (1, H+2, W+2, Cin)  padded image; block index constant over the
    #                             row-tile axis -> DMA'd once per image.
    # w_ref : (9*Cin, Cout)       3x3 weights, (dy, dx, ci)-major, pre-cast to
    #                             mxu_dtype in the wrapper.
    # s_ref : (1, Cin) f32        folded BN scale of the previous layer (conv2)
    # b_ref : (1, Cin) f32        folded BN bias  of the previous layer (conv2)
    # y_ref : (1, H+2, W+2, Cout) resident padded output   (emit_padded_out)
    #         (1, TH,  W,   Cout) row-tiled raw output      (otherwise)
    # st_ref: (1, 2, Cout) f32    per-image [sum, sum_sq], accumulated over tiles
    Cin = x_ref.shape[3]
    Cout = st_ref.shape[2]
    r = pl.program_id(1)
    r0 = pl.multiple_of(r * TH, TH)

    @pl.when(r == 0)
    def _init():
        st_ref[...] = jnp.zeros_like(st_ref)
        if emit_padded_out:
            # Output block stays resident across the row-tile axis; zero it
            # once so the 1-pixel halo (never written by the interior stores)
            # is exactly zero for the next conv.
            y_ref[...] = jnp.zeros_like(y_ref)

    # (TH+2, W+2, Cin) slab of padded input rows [r0, r0+TH+2).
    slab = x_ref[0, pl.ds(r0, TH + 2), :, :]
    if apply_input_act:
        # Previous conv's folded BN affine + ReLU, in f32.  The stored halo is
        # zero, but affine+ReLU turns it into relu(bias) != 0, so re-zero the
        # halo with a mask in global padded coordinates.
        s = s_ref[...].astype(jnp.float32).reshape(1, 1, Cin)
        b = b_ref[...].astype(jnp.float32).reshape(1, 1, Cin)
        slab = jnp.maximum(slab.astype(jnp.float32) * s + b, 0.0)
        row = r0 + jax.lax.broadcasted_iota(jnp.int32, (TH + 2, W + 2, 1), 0)
        col = jax.lax.broadcasted_iota(jnp.int32, (TH + 2, W + 2, 1), 1)
        interior = (row >= 1) & (row <= H) & (col >= 1) & (col <= W)
        slab = jnp.where(interior, slab, 0.0)
    slab = slab.astype(mxu_dtype)          # MXU operand dtype (bf16 fast path)

    def tap(dy, dx):
        return slab[dy:dy + TH, dx:dx + W, :].reshape(TH * W, Cin)

    if use_im2col:
        # Small Cin: one MXU matmul with K = 9*Cin (taps already mxu_dtype).
        patch = jnp.concatenate(
            [tap(dy, dx) for dy in range(3) for dx in range(3)], axis=1)
        h = jnp.dot(patch, w_ref[...], preferred_element_type=jnp.float32)
    else:
        # Large Cin: 9 accumulating K=Cin matmuls, no materialized patch.
        h = jnp.zeros((TH * W, Cout), jnp.float32)
        for t, (dy, dx) in enumerate(
                (dy, dx) for dy in range(3) for dx in range(3)):
            h = h + jnp.dot(tap(dy, dx), w_ref[t * Cin:(t + 1) * Cin, :],
                            preferred_element_type=jnp.float32)

    # BN partial statistics from the f32 accumulator; single combined (2, Cout)
    # accumulate/store per step.
    st = jnp.concatenate([jnp.sum(h, axis=0, keepdims=True),
                          jnp.sum(h * h, axis=0, keepdims=True)], axis=0)
    st_ref[0] = st_ref[0] + st

    hb = h.reshape(TH, W, Cout).astype(y_ref.dtype)
    if emit_padded_out:
        # Store a full-width (W+2) row slab so the store stays aligned; the
        # rewritten W-halo columns are just zeros.
        zcol = jnp.zeros((TH, 1, Cout), y_ref.dtype)
        y_ref[0, pl.ds(r0 + 1, TH)] = jnp.concatenate([zcol, hb, zcol], axis=1)
    else:
        y_ref[0] = hb


# --------------------------------------------------------------------------- #
# pallas_call wrapper for one conv (+ BN partial stats).                       #
# --------------------------------------------------------------------------- #
def _pick_row_tile(H, W, Cin, Cout, mxu_itemsize, override=None,
                   budget_bytes=8 * 2**20):
    """Largest divisor of H whose per-tile temporaries fit the VMEM budget."""
    if override is not None:
        assert H % override == 0, "row_tile must divide H"
        return override
    for th in range(H, 0, -1):
        if H % th:
            continue
        work = (th * W * 9 * Cin * mxu_itemsize        # im2col patch (worst)
                + th * W * Cout * 4                    # f32 accumulator
                + (th + 2) * (W + 2) * Cin * 4)        # f32 affine slab
        if work <= budget_bytes:
            return th
    return 1


def _conv3x3_bn_stats(xpad, w2d, H, W, *, emit_padded_out, in_scale=None,
                      in_bias=None, mxu_dtype=jnp.bfloat16, row_tile=None,
                      conv_impl=None):
    N, Cin = xpad.shape[0], xpad.shape[3]
    Cout = w2d.shape[1]
    mdt = jnp.dtype(mxu_dtype)

    apply_act = in_scale is not None
    if apply_act:
        in_scale = in_scale.reshape(1, Cin).astype(jnp.float32)
        in_bias = in_bias.reshape(1, Cin).astype(jnp.float32)
    else:  # never read by the kernel (the static flag skips the math)
        in_scale = jnp.ones((1, Cin), jnp.float32)
        in_bias = jnp.zeros((1, Cin), jnp.float32)

    if conv_impl is None:
        use_im2col = Cin < 128   # K=Cin already fills the MXU depth beyond this
    else:
        use_im2col = (conv_impl == "im2col")

    TH = _pick_row_tile(H, W, Cin, Cout, mdt.itemsize, override=row_tile)
    RT = H // TH

    if emit_padded_out:
        y_shape = (N, H + 2, W + 2, Cout)
        y_spec = pl.BlockSpec((1, H + 2, W + 2, Cout), lambda n, r: (n, 0, 0, 0))
        y_blk_bytes = (H + 2) * (W + 2) * Cout * mdt.itemsize
    else:
        y_shape = (N, H, W, Cout)
        y_spec = pl.BlockSpec((1, TH, W, Cout), lambda n, r: (n, r, 0, 0))
        y_blk_bytes = TH * W * Cout * mdt.itemsize

    # Scoped-VMEM request derived from the actual block / temporary sizes,
    # capped below v7x's 64 MiB/TC physical VMEM.
    blk = ((H + 2) * (W + 2) * Cin * xpad.dtype.itemsize
           + 9 * Cin * Cout * mdt.itemsize
           + y_blk_bytes + 2 * Cout * 4 + 2 * Cin * 4)
    tmp = (TH * W * 9 * Cin * mdt.itemsize + TH * W * Cout * 4
           + (TH + 2) * (W + 2) * Cin * 4)
    vmem_limit = int(min(48 * 2**20,
                         max(16 * 2**20, 2 * blk + 2 * tmp + 2 * 2**20)))

    kernel = functools.partial(_conv3x3_stats_kernel, apply_act,
                               emit_padded_out, use_im2col, TH, H, W, mdt)
    y, stats = pl.pallas_call(
        kernel,
        out_shape=(jax.ShapeDtypeStruct(y_shape, mdt),
                   jax.ShapeDtypeStruct((N, 2, Cout), jnp.float32)),
        grid=(N, RT),
        in_specs=[pl.BlockSpec((1, H + 2, W + 2, Cin), lambda n, r: (n, 0, 0, 0)),
                  pl.BlockSpec((9 * Cin, Cout), lambda n, r: (0, 0)),
                  pl.BlockSpec((1, Cin), lambda n, r: (0, 0)),
                  pl.BlockSpec((1, Cin), lambda n, r: (0, 0))],
        out_specs=(y_spec,
                   pl.BlockSpec((1, 2, Cout), lambda n, r: (n, 0, 0))),
        compiler_params=pltpu.CompilerParams(
            # The stats block (and conv1's padded output) are revisited across
            # the row-tile axis -> "arbitrary"; batch axis -> megacore.
            dimension_semantics=("parallel", "arbitrary"),
            vmem_limit_bytes=vmem_limit),
    )(xpad, w2d, in_scale, in_bias)
    return y, stats


def _bn_scale_bias(stats, gamma, beta, count):
    """Fold training-mode BN (biased var, eps=1e-5) into per-channel scale/bias."""
    # TODO(synk): at UNet-scale pixel counts combine the per-image partials with
    #             a mean-shifted / Welford update instead of raw E[x^2]-mean^2.
    s = jnp.sum(stats[:, 0, :], axis=0)
    ss = jnp.sum(stats[:, 1, :], axis=0)
    mean = s / count
    var = jnp.maximum(ss / count - mean * mean, 0.0)
    scale = gamma.astype(jnp.float32) * jax.lax.rsqrt(var + _EPS)
    bias = beta.astype(jnp.float32) - mean * scale
    return scale, bias


# --------------------------------------------------------------------------- #
# DoubleConv forward.                                                          #
# --------------------------------------------------------------------------- #
def double_conv(x_nchw, w1_oihw, g1, b1, w2_oihw, g2, b2, *, residual=False,
                mxu_dtype=jnp.bfloat16, row_tile=None, conv_impl=None):
    N, Cin, H, W = x_nchw.shape
    Cmid = w1_oihw.shape[0]
    Cout = w2_oihw.shape[0]
    if residual:
        assert Cin == Cout, "residual DoubleConv requires in_channels == out_channels"
    mdt = jnp.dtype(mxu_dtype)

    # Layout plumbing; XLA fuses transpose + pad + cast into a single pass.
    x_nhwc = jnp.transpose(x_nchw, (0, 2, 3, 1)).astype(mdt)
    xpad = jnp.pad(x_nhwc, ((0, 0), (1, 1), (1, 1), (0, 0)))
    w1_2d = jnp.transpose(w1_oihw, (2, 3, 1, 0)).reshape(9 * Cin, Cmid).astype(mdt)
    w2_2d = jnp.transpose(w2_oihw, (2, 3, 1, 0)).reshape(9 * Cmid, Cout).astype(mdt)
    npix = N * H * W

    # conv1: raw output written straight into a zero-halo padded buffer (no
    # extra jnp.pad HBM pass) + per-image BN1 partial sums.
    h1pad, st1 = _conv3x3_bn_stats(xpad, w1_2d, H, W, emit_padded_out=True,
                                   mxu_dtype=mdt, row_tile=row_tile,
                                   conv_impl=conv_impl)
    s1, t1 = _bn_scale_bias(st1, g1, b1, npix)

    # conv2: BN1 scale/bias + ReLU fused into its input path + BN2 partials.
    h2, st2 = _conv3x3_bn_stats(h1pad, w2_2d, H, W, emit_padded_out=False,
                                in_scale=s1, in_bias=t1, mxu_dtype=mdt,
                                row_tile=row_tile, conv_impl=conv_impl)
    s2, t2 = _bn_scale_bias(st2, g2, b2, npix)

    # BN2 affine (+ residual, ReLU) fused by XLA with the mandatory NHWC->NCHW
    # output transpose: one elementwise HBM pass.
    out = h2.astype(jnp.float32) * s2 + t2
    if residual:
        out = jnp.maximum(x_nhwc.astype(jnp.float32) + out, 0.0)
    return jnp.transpose(out, (0, 3, 1, 2)).astype(x_nchw.dtype)


# --------------------------------------------------------------------------- #
# Pure-JAX reference (NCHW, training-mode BatchNorm).                          #
# --------------------------------------------------------------------------- #
def double_conv_ref(x, w1, g1, b1, w2, g2, b2, *, residual=False):
    def conv(h, w):
        return jax.lax.conv_general_dilated(
            h, w, (1, 1), ((1, 1), (1, 1)),
            dimension_numbers=('NCHW', 'OIHW', 'NCHW'))

    def bn(h, g, b):
        mean = jnp.mean(h, axis=(0, 2, 3), keepdims=True)
        var = jnp.mean((h - mean) ** 2, axis=(0, 2, 3), keepdims=True)
        return ((h - mean) * jax.lax.rsqrt(var + _EPS)
                * g.reshape(1, -1, 1, 1) + b.reshape(1, -1, 1, 1))

    h = jax.nn.relu(bn(conv(x, w1), g1, b1))
    h = bn(conv(h, w2), g2, b2)
    if residual:
        h = jax.nn.relu(x + h)
    return h


if __name__ == "__main__":
    key = jax.random.PRNGKey(0)
    (kx, kw1, kw2, kg1, kb1, kg2, kb2, kxr, kwr1, kwr2) = jax.random.split(key, 10)

    # Base config: batch=2, in=4, mid=out=8, 16x16 spatial.
    N, Cin, Cmid, Cout, H, W = 2, 4, 8, 8, 16, 16
    x = jax.random.normal(kx, (N, Cin, H, W), jnp.float32)
    w1 = jax.random.normal(kw1, (Cmid, Cin, 3, 3), jnp.float32) * 0.1   # OIHW
    w2 = jax.random.normal(kw2, (Cout, Cmid, 3, 3), jnp.float32) * 0.1  # OIHW
    g1 = 1.0 + 0.1 * jax.random.normal(kg1, (Cmid,), jnp.float32)
    b1 = 0.1 * jax.random.normal(kb1, (Cmid,), jnp.float32)
    g2 = 1.0 + 0.1 * jax.random.normal(kg2, (Cout,), jnp.float32)
    b2 = 0.1 * jax.random.normal(kb2, (Cout,), jnp.float32)

    ref = double_conv_ref(x, w1, g1, b1, w2, g2, b2)

    # 1) f32 MXU operands + f32 intermediates, single row tile.
    out = jax.block_until_ready(
        double_conv(x, w1, g1, b1, w2, g2, b2, mxu_dtype=jnp.float32))
    assert out.shape == (N, Cout, H, W)
    assert jnp.allclose(out, ref, rtol=1e-2, atol=1e-2), \
        float(jnp.max(jnp.abs(out - ref)))

    # 2) f32, row-tiled grid (4 row tiles per image) -> exercises the resident
    #    padded-output / stats-accumulator path across row tiles.
    out_rt = jax.block_until_ready(
        double_conv(x, w1, g1, b1, w2, g2, b2, mxu_dtype=jnp.float32, row_tile=4))
    assert jnp.allclose(out_rt, ref, rtol=1e-2, atol=1e-2), \
        float(jnp.max(jnp.abs(out_rt - ref)))

    # 3) default fast path: bf16 weights / activations / intermediate, f32
    #    accumulation + f32 BN statistics.
    out_bf16 = jax.block_until_ready(double_conv(x, w1, g1, b1, w2, g2, b2))
    assert jnp.allclose(out_bf16, ref, rtol=1e-1, atol=1e-1), \
        float(jnp.max(jnp.abs(out_bf16 - ref)))

    # 4) residual path + the 9-accumulating-dot conv implementation (the path
    #    used automatically once Cin >= 128), with 2 row tiles per image.
    Cr = 8
    xr = jax.random.normal(kxr, (N, Cr, H, W), jnp.float32)
    wr1 = jax.random.normal(kwr1, (Cr, Cr, 3, 3), jnp.float32) * 0.1
    wr2 = jax.random.normal(kwr2, (Cr, Cr, 3, 3), jnp.float32) * 0.1
    ref_r = double_conv_ref(xr, wr1, g2, b2, wr2, g2, b2, residual=True)
    out_r = jax.block_until_ready(
        double_conv(xr, wr1, g2, b2, wr2, g2, b2, residual=True,
                    mxu_dtype=jnp.float32, row_tile=8, conv_impl="accumulate"))
    assert jnp.allclose(out_r, ref_r, rtol=1e-2, atol=1e-2), \
        float(jnp.max(jnp.abs(out_r - ref_r)))

    print("KERNEL_OK")
</pallas_src>

<mosaic_0001>
module attributes {stable_mosaic.version = 11 : i64} {
  func.func @_conv3x3_stats_kernel(%arg0: i32, %arg1: i32, %arg2: memref<1x18x18x4xf32, #tpu.memory_space<vmem>>, %arg3: memref<36x8xf32, #tpu.memory_space<vmem>>, %arg4: memref<1x4xf32, #tpu.memory_space<vmem>>, %arg5: memref<1x4xf32, #tpu.memory_space<vmem>>, %arg6: memref<1x18x18x8xf32, #tpu.memory_space<vmem>>, %arg7: memref<1x2x8xf32, #tpu.memory_space<vmem>>) attributes {dimension_semantics = [#tpu.dimension_semantics<parallel>, #tpu.dimension_semantics<arbitrary>], iteration_bounds = array<i64: 2, 1>, scalar_prefetch = 0 : i64, scratch_operands = 0 : i64, tpu.core_type = #tpu.core_type<tc>, window_params = [{transform_indices = @transform_0, window_bounds = array<i64: 1, 18, 18, 4>}, {pipeline_mode = #tpu.pipeline_mode<synchronous>, transform_indices = @transform_1, window_bounds = array<i64: 36, 8>}, {pipeline_mode = #tpu.pipeline_mode<synchronous>, transform_indices = @transform_2, window_bounds = array<i64: 1, 4>}, {pipeline_mode = #tpu.pipeline_mode<synchronous>, transform_indices = @transform_3, window_bounds = array<i64: 1, 4>}, {transform_indices = @transform_4, window_bounds = array<i64: 1, 18, 18, 8>}, {transform_indices = @transform_5, window_bounds = array<i64: 1, 2, 8>}]} {
    %c16_i32 = arith.constant 16 : i32
    %0 = arith.muli %arg1, %c16_i32 : i32
    %1 = tpu.assume_multiple %0, 16 : i32
    %c0_i32 = arith.constant 0 : i32
    %2 = arith.cmpi eq, %arg1, %c0_i32 : i32
    %3 = arith.extui %2 : i1 to i32
    %c0_i32_0 = arith.constant 0 : i32
    %4 = arith.cmpi ne, %3, %c0_i32_0 : i32
    scf.if %4 {
      %cst_17 = arith.constant 0.000000e+00 : f32
      %49 = vector.broadcast %cst_17 : f32 to vector<1x2x8xf32>
      %c0_18 = arith.constant 0 : index
      %c0_19 = arith.constant 0 : index
      %c0_20 = arith.constant 0 : index
      %50 = vector.load %arg7[%c0_18, %c0_19, %c0_20] : memref<1x2x8xf32, #tpu.memory_space<vmem>>, vector<1x2x8xf32>
      tpu.vector_store %arg7[%c0_18, %c0_19, %c0_20], %49 {strides = array<i32>} : memref<1x2x8xf32, #tpu.memory_space<vmem>>, vector<1x2x8xf32>,
      %cst_21 = arith.constant 0.000000e+00 : f32
      %51 = vector.broadcast %cst_21 : f32 to vector<1x18x18x8xf32>
      %c0_22 = arith.constant 0 : index
      %c0_23 = arith.constant 0 : index
      %c0_24 = arith.constant 0 : index
      %c0_25 = arith.constant 0 : index
      %52 = vector.load %arg6[%c0_22, %c0_23, %c0_24, %c0_25] : memref<1x18x18x8xf32, #tpu.memory_space<vmem>>, vector<1x18x18x8xf32>
      tpu.vector_store %arg6[%c0_22, %c0_23, %c0_24, %c0_25], %51 {strides = array<i32>} : memref<1x18x18x8xf32, #tpu.memory_space<vmem>>, vector<1x18x18x8xf32>,
    } else {
    }
    %c0 = arith.constant 0 : index
    %5 = arith.index_cast %1 : i32 to index
    %c0_1 = arith.constant 0 : index
    %c0_2 = arith.constant 0 : index
    %6 = vector.load %arg2[%c0, %5, %c0_1, %c0_2] : memref<1x18x18x4xf32, #tpu.memory_space<vmem>>, vector<1x18x18x4xf32>
    %7 = vector.shape_cast %6 : vector<1x18x18x4xf32> to vector<18x18x4xf32>
    %8 = vector.extract_strided_slice %7 {offsets = [0, 0, 0], sizes = [16, 16, 4], strides = [1, 1, 1]} : vector<18x18x4xf32> to vector<16x16x4xf32>
    %9 = vector.shape_cast %8 : vector<16x16x4xf32> to vector<256x4xf32>
    %10 = vector.extract_strided_slice %7 {offsets = [0, 1, 0], sizes = [16, 16, 4], strides = [1, 1, 1]} : vector<18x18x4xf32> to vector<16x16x4xf32>
    %11 = vector.shape_cast %10 : vector<16x16x4xf32> to vector<256x4xf32>
    %12 = vector.extract_strided_slice %7 {offsets = [0, 2, 0], sizes = [16, 16, 4], strides = [1, 1, 1]} : vector<18x18x4xf32> to vector<16x16x4xf32>
    %13 = vector.shape_cast %12 : vector<16x16x4xf32> to vector<256x4xf32>
    %14 = vector.extract_strided_slice %7 {offsets = [1, 0, 0], sizes = [16, 16, 4], strides = [1, 1, 1]} : vector<18x18x4xf32> to vector<16x16x4xf32>
    %15 = vector.shape_cast %14 : vector<16x16x4xf32> to vector<256x4xf32>
    %16 = vector.extract_strided_slice %7 {offsets = [1, 1, 0], sizes = [16, 16, 4], strides = [1, 1, 1]} : vector<18x18x4xf32> to vector<16x16x4xf32>
    %17 = vector.shape_cast %16 : vector<16x16x4xf32> to vector<256x4xf32>
    %18 = vector.extract_strided_slice %7 {offsets = [1, 2, 0], sizes = [16, 16, 4], strides = [1, 1, 1]} : vector<18x18x4xf32> to vector<16x16x4xf32>
    %19 = vector.shape_cast %18 : vector<16x16x4xf32> to vector<256x4xf32>
    %20 = vector.extract_strided_slice %7 {offsets = [2, 0, 0], sizes = [16, 16, 4], strides = [1, 1, 1]} : vector<18x18x4xf32> to vector<16x16x4xf32>
    %21 = vector.shape_cast %20 : vector<16x16x4xf32> to vector<256x4xf32>
    %22 = vector.extract_strided_slice %7 {offsets = [2, 1, 0], sizes = [16, 16, 4], strides = [1, 1, 1]} : vector<18x18x4xf32> to vector<16x16x4xf32>
    %23 = vector.shape_cast %22 : vector<16x16x4xf32> to vector<256x4xf32>
    %24 = vector.extract_strided_slice %7 {offsets = [2, 2, 0], sizes = [16, 16, 4], strides = [1, 1, 1]} : vector<18x18x4xf32> to vector<16x16x4xf32>
    %25 = vector.shape_cast %24 : vector<16x16x4xf32> to vector<256x4xf32>
    %26 = tpu.concatenate %9, %11, %13, %15, %17, %19, %21, %23, %25 in 1 : vector<256x4xf32>, vector<256x4xf32>, vector<256x4xf32>, vector<256x4xf32>, vector<256x4xf32>, vector<256x4xf32>, vector<256x4xf32>, vector<256x4xf32>, vector<256x4xf32> -> vector<256x36xf32>
    %c0_3 = arith.constant 0 : index
    %c0_4 = arith.constant 0 : index
    %27 = vector.load %arg3[%c0_3, %c0_4] : memref<36x8xf32, #tpu.memory_space<vmem>>, vector<36x8xf32>
    %cst = arith.constant dense<0.000000e+00> : vector<256x8xf32>
    %28 = tpu.matmul %26, %27, %cst {dimension_numbers = #tpu.dot_dimension_numbers<[1], [0], [0], [1], [0, 0, 1, 1], [], []>} : vector<256x36xf32>, vector<36x8xf32>, vector<256x8xf32> -> vector<256x8xf32>
    %cst_5 = arith.constant dense<0.000000e+00> : vector<8xf32>
    %29 = vector.multi_reduction <add>, %28, %cst_5 [0] : vector<256x8xf32> to vector<8xf32>
    %30 = vector.shape_cast %29 : vector<8xf32> to vector<1x8xf32>
    %31 = arith.mulf %28, %28 : vector<256x8xf32>
    %cst_6 = arith.constant dense<0.000000e+00> : vector<8xf32>
    %32 = vector.multi_reduction <add>, %31, %cst_6 [0] : vector<256x8xf32> to vector<8xf32>
    %33 = vector.shape_cast %32 : vector<8xf32> to vector<1x8xf32>
    %34 = tpu.concatenate %30, %33 in 0 : vector<1x8xf32>, vector<1x8xf32> -> vector<2x8xf32>
    %c0_7 = arith.constant 0 : index
    %c0_8 = arith.constant 0 : index
    %c0_9 = arith.constant 0 : index
    %35 = vector.load %arg7[%c0_7, %c0_8, %c0_9] : memref<1x2x8xf32, #tpu.memory_space<vmem>>, vector<1x2x8xf32>
    %36 = vector.shape_cast %35 : vector<1x2x8xf32> to vector<2x8xf32>
    %37 = arith.addf %36, %34 : vector<2x8xf32>
    %c0_10 = arith.constant 0 : index
    %c0_11 = arith.constant 0 : index
    %c0_12 = arith.constant 0 : index
    %38 = vector.load %arg7[%c0_10, %c0_11, %c0_12] : memref<1x2x8xf32, #tpu.memory_space<vmem>>, vector<1x2x8xf32>
    %39 = vector.shape_cast %38 : vector<1x2x8xf32> to vector<2x8xf32>
    %40 = vector.shape_cast %37 : vector<2x8xf32> to vector<1x2x8xf32>
    tpu.vector_store %arg7[%c0_10, %c0_11, %c0_12], %40 {strides = array<i32>} : memref<1x2x8xf32, #tpu.memory_space<vmem>>, vector<1x2x8xf32>,
    %41 = vector.shape_cast %28 : vector<256x8xf32> to vector<16x16x8xf32>
    %cst_13 = arith.constant 0.000000e+00 : f32
    %42 = vector.broadcast %cst_13 : f32 to vector<16x1x8xf32>
    %43 = tpu.concatenate %42, %41, %42 in 1 : vector<16x1x8xf32>, vector<16x16x8xf32>, vector<16x1x8xf32> -> vector<16x18x8xf32>
    %c1_i32 = arith.constant 1 : i32
    %44 = arith.addi %1, %c1_i32 : i32
    %c0_14 = arith.constant 0 : index
    %45 = arith.index_cast %44 : i32 to index
    %c0_15 = arith.constant 0 : index
    %c0_16 = arith.constant 0 : index
    %46 = vector.load %arg6[%c0_14, %45, %c0_15, %c0_16] : memref<1x18x18x8xf32, #tpu.memory_space<vmem>>, vector<1x16x18x8xf32>
    %47 = vector.shape_cast %46 : vector<1x16x18x8xf32> to vector<16x18x8xf32>
    %48 = vector.shape_cast %43 : vector<16x18x8xf32> to vector<1x16x18x8xf32>
    tpu.vector_store %arg6[%c0_14, %45, %c0_15, %c0_16], %48 {strides = array<i32>} : memref<1x18x18x8xf32, #tpu.memory_space<vmem>>, vector<1x16x18x8xf32>,
    return
  }
  func.func @transform_0(%arg0: i32, %arg1: i32) -> (i32, i32, i32, i32) {
    %c0_i32 = arith.constant 0 : i32
    %c0_i32_0 = arith.constant 0 : i32
    %c0_i32_1 = arith.constant 0 : i32
    %c0_i32_2 = arith.constant 0 : i32
    return %arg0, %c0_i32, %c0_i32_0, %c0_i32_1 : i32, i32, i32, i32
  }
  func.func @transform_1(%arg0: i32, %arg1: i32) -> (i32, i32) {
    %c0_i32 = arith.constant 0 : i32
    %c0_i32_0 = arith.constant 0 : i32
    %c0_i32_1 = arith.constant 0 : i32
    return %c0_i32, %c0_i32_0 : i32, i32
  }
  func.func @transform_2(%arg0: i32, %arg1: i32) -> (i32, i32) {
    %c0_i32 = arith.constant 0 : i32
    %c0_i32_0 = arith.constant 0 : i32
    %c0_i32_1 = arith.constant 0 : i32
    return %c0_i32, %c0_i32_0 : i32, i32
  }
  func.func @transform_3(%arg0: i32, %arg1: i32) -> (i32, i32) {
    %c0_i32 = arith.constant 0 : i32
    %c0_i32_0 = arith.constant 0 : i32
    %c0_i32_1 = arith.constant 0 : i32
    return %c0_i32, %c0_i32_0 : i32, i32
  }
  func.func @transform_4(%arg0: i32, %arg1: i32) -> (i32, i32, i32, i32) {
    %c0_i32 = arith.constant 0 : i32
    %c0_i32_0 = arith.constant 0 : i32
    %c0_i32_1 = arith.constant 0 : i32
    %c0_i32_2 = arith.constant 0 : i32
    return %arg0, %c0_i32, %c0_i32_0, %c0_i32_1 : i32, i32, i32, i32
  }
  func.func @transform_5(%arg0: i32, %arg1: i32) -> (i32, i32, i32) {
    %c0_i32 = arith.constant 0 : i32
    %c0_i32_0 = arith.constant 0 : i32
    %c0_i32_1 = arith.constant 0 : i32
    return %arg0, %c0_i32, %c0_i32_0 : i32, i32, i32
  }
}

</mosaic_0001>

<bundles_post_ra>
// kernel: tpu_custom_call.1
= control target key start
LH: loop header
LB: loop body
LE: loop exit
PB: predicated region body
PF: predicated region fallthrough
CT: control target
= control target key end

     0   :  { %11 = vsyncpa [#allocation3], 0  ;;  %s4979_s0 = inlined_call_operand.vmem [shape: f32[2,18,18,4], index: 0, kind: input, shape index: {}]   ;;  %s4980_s1 = inlined_call_operand.vmem [shape: f32[36,8], index: 1, kind: input, shape index: {}]   ;;  %s4981_s2 = inlined_call_operand.vmem [shape: f32[1,4], index: 2, kind: input, shape index: {}]   ;;  %s4982_s3 = inlined_call_operand.vmem [shape: f32[1,4], index: 3, kind: input, shape index: {}]   ;;  %s4983_s4 = inlined_call_operand.vmem [shape: f32[2,18,18,8], index: 4, kind: output, shape index: {0}]   ;;  %s4984_s5 = inlined_call_operand.hbm [shape: f32[2,2,8], index: 5, kind: output, shape index: {1}]  }
   0x1   :  { %13 = vsyncpa [#allocation3 + $0x1], 0  ;;  %s2883_s18 = smov 0   ;;  %s2885_s19 = smov 0  }
   0x2   :  { %s2887_s20 = smov 0   ;;  %s2889_s21 = smov 0  }
   0x3   :  { %s2891_s2 = smov 0   ;;  %s2893_s22 = smov 0  }
   0x4 LB: > { %s2472_s3 = sadd.s32 4294967295, %s2841_s22   ;;  %s2473_s23 = sadd.s32 4294967294, %s2841_s22   ;;  %s2841_s22 = sphi %s2893_s22, %s19_s22   ;;  %s2837_s2 = sphi %s2891_s2, %s5239_s2   ;;  %s2833_s21 = sphi %s2889_s21, %s5238_s21   ;;  %s2829_s20 = sphi %s2887_s20, %s5237_s20   ;;  %s2825_s19 = sphi %s2885_s19, %s5236_s19   ;;  %s2821_s18 = sphi %s2883_s18, %s5235_s18  }
   0x5   : > { %s31_s24 = sadd.s32 1, %s2837_s2  ;;  %s153_s25 = sadd.s32 1, %s2829_s20 }
   0x6   : > { %p33_p0 = scmp.ge.s32.totalorder %s31_s24, 2  ;;  %p163_p1 = scmp.ne.s32.totalorder %s2829_s20, %s2825_s19 }
   0x7   : > { %p164_p2 = scmp.eq.s32.totalorder %s2472_s3, 1  ;;  %p169_p3 = scmp.ne.s32.totalorder %s2825_s19, %s2821_s18 }
   0x8   : > { %s5241_s24 = smov (%p33_p0, %s31_s24), 0  ;;  %p170_p5 = scmp.eq.s32.totalorder %s2473_s23, 1 }
   0x9   : > { %p2923_p4 = por %p164_p2, %p163_p1  ;;  %s150_s27 = ssub.s32 %s2837_s2, %s5241_s24 }
   0xa   : > { %p2476_p6 = scmp.ge.s32.totalorder %s2841_s22, 1  ;;  %p151_p7 = scmp.eq.s32.totalorder %s150_s27, 0 }
   0xb   : > { %p2930_p8 = por %p170_p5, %p169_p3  ;;  %p205_p9 = scmp.lt.s32.totalorder %s2841_s22, 3 }
   0xc   : > { %s2936_s29 = scalar_select %p151_p7, %s2829_s20, %s153_s25  }
   0xd   : > { %p206_p10 = pnand %p2476_p6, %p205_p9 }
   0xf   : > { %209 = sbr.rel (%p206_p10) target bundleno = 887 (0x377), region = 36 }
  0x14   : > { %p238_p11 = scmp.lt.s32.totalorder %s2833_s21, 1  ;;  %vm414_vm0 = vcmask 1046528   ;;  %s2843_s10 = smov 4   ;;  %vm495_vm1 = vcmask 1045504   ;;  %vm1736_vm2 = vcmask 1043456   ;;  %vm1370_vm3 = vcmask 31744  }
  0x15   : > { %s2844_s11 = smov 8   ;;  %s2845_s12 = smov 12   ;;  %vm255_vm4 = vcmask 64512   ;;  %vm1436_vm5 = vcmask 97280   ;;  %vm1469_vm6 = vcmask 130048   ;;  %vm1502_vm7 = vcmask 162816  }
  0x16   : > { %s2940_s30 = scalar_select %p238_p11, %s2833_s21, 1  ;;  %vm1535_vm8 = vcmask 195584   ;;  %vm1568_vm9 = vcmask 228352   ;;  %vm1601_vm10 = vcmask 261120   ;;  %vm1639_vm11 = vcmask 293888  }
  0x17   : > { %s2846_s13 = smov 16   ;;  %s2847_s16 = smov 20   ;;  %vm253_vm12 = vcmask 58368   ;;  %vm2135_vm13 = vcmask 1040384  }
  0x18   : > { %s2670_s6 = smul.u32 432, %s2940_s30  ;;  %s2848_s8 = smov 24  }
  0x19   : > { %s2849_s14 = smov 28   ;;  %s2850_s15 = smov 32  }
  0x1a   : > { %s2948_s9 = scalar_lea.vmem %s4979_s0, %s2670_s6  ;;  %s4045_s23 = scalar_lea.vmem %s4983_s4, %s2670_s6 }
  0x1b   : > { %v2951_v0 = vld [vmem:[%s2948_s9 + $0x18] sm:$0xff]  ;;  %v2954_v1 = vld [vmem:[%s2948_s9 + $0x20] sm:$0xff]  ;;  %v2962_v5 = vld [vmem:[%s2948_s9 + $0x8] sm:$0xff]  ;;  %s235_s30 = sand.u32 1, %s2825_s19  }
  0x1c   : > { %v2957_v2 = vld [vmem:[%s2948_s9] sm:$0xff]  ;;  %v420_v3 = vrot.slane %v2951_v0, 1  ;;  %v421_v4 = vrot.slane %v2954_v1, 1  ;;  %5060 = vst [vmem:[#allocation6_spill] sm:$0xff] %v2962_v5  ;;  %v2966_v7 = vld [vmem:[%s2948_s9 + $0x28] sm:$0x3] }
  0x1d   : > { %5059 = vst [vmem:[#allocation5_spill] sm:$0xff] %v2957_v2  ;;  %v415_v6 = vrot.slane %v2957_v2, 1  ;;  %v416_v8 = vrot.slane %v2962_v5, 1  ;;  %v423_v9 = vrot.slane %v2966_v7, 1  ;;  %v2971_v10 = vld [vmem:[%s2948_s9 + $0x10] sm:$0x3] }
  0x1e   : > { %v2974_v11 = vld [vmem:[%s2948_s9 + $0x38] sm:$0xff]  ;;  %v2977_v12 = vsel %vm414_vm0, %v420_v3, %v421_v4  ;;  %v418_v13 = vrot.slane %v2971_v10, 1  ;;  %v2981_v14 = vld [vmem:[%s2948_s9 + $0x40] sm:$0x3]  ;;  %v2984_v15 = vld [vmem:[%s2948_s9 + $0x30] sm:$0xff]  ;;  %s2477_s6 = sshll.u32 %s235_s30, 1 }
  0x1f   : > { %606 = vrot.lane.b32.xlu1 %v2977_v12, %s2843_s10  ;;  %v417_v16 = vsel %vm414_vm0, %v415_v6, %v416_v8  ;;  %v2991_v17 = vsel %vm414_vm0, %v421_v4, %v423_v9  ;;  %v426_v18 = vrot.slane %v2974_v11, 1  ;;  %v428_v19 = vrot.slane %v2981_v14, 1  ;;  %v2998_v22 = vld [vmem:[%s2948_s9 + $0x50] sm:$0xff]  ;;  %v3001_v23 = vld [vmem:[%s2948_s9 + $0x58] sm:$0x3]  ;;  %v3004_v24 = vld [vmem:[%s2948_s9 + $0x48] sm:$0xff] }
  0x20   : > { %602 = vrot.lane.b32.xlu0 %v417_v16, %s2843_s10  ;;  %v419_v20 = vsel %vm414_vm0, %v416_v8, %v418_v13  ;;  %v425_v21 = vrot.slane %v2984_v15, 1  ;;  %v431_v26 = vrot.slane %v2998_v22, 1  ;;  %v433_v27 = vrot.slane %v3001_v23, 1  ;;  %v3019_v30 = vld [vmem:[%s2948_s9 + $0x68] sm:$0xff]  ;;  %v3022_v31 = vld [vmem:[%s2948_s9 + $0x70] sm:$0x3] }
  0x21   : > { %v3010_v25 = vsel %vm414_vm0, %v426_v18, %v428_v19  ;;  %v430_v29 = vrot.slane %v3004_v24, 1  ;;  %v3025_v32 = vld [vmem:[%s2948_s9 + $0x60] sm:$0xff]  ;;  %v436_v34 = vrot.slane %v3019_v30, 1  ;;  %v438_v35 = vrot.slane %v3022_v31, 1  ;;  %v3044_v39 = vld [vmem:[%s2948_s9 + $0x88] sm:$0x3] }
  0x22   : > { %v3015_v28 = vsel %vm414_vm0, %v425_v21, %v426_v18  ;;  %v3032_v33 = vsel %vm414_vm0, %v431_v26, %v433_v27  ;;  %v435_v37 = vrot.slane %v3025_v32, 1  ;;  %v3041_v38 = vld [vmem:[%s2948_s9 + $0x80] sm:$0xff]  ;;  %v3047_v40 = vld [vmem:[%s2948_s9 + $0x78] sm:$0xff]  ;;  %v443_v43 = vrot.slane %v3044_v39, 1  ;;  %v3069_v48 = vld [vmem:[%s2948_s9 + $0x90] sm:$0xff]  ;;  %s2358_s7 = scalar_lea.sflag [#allocation3], %s235_s30 }
  0x23   : > { %608 = vrot.lane.b32.xlu1 %v2991_v17, %s2843_s10  ;;  %5061 = vst [vmem:[#allocation7_spill] sm:$0xff] %v3032_v33  ;;  %v3037_v36 = vsel %vm414_vm0, %v430_v29, %v431_v26  ;;  %v3054_v41 = vsel %vm414_vm0, %v436_v34, %v438_v35  ;;  %v441_v42 = vrot.slane %v3041_v38, 1  ;;  %v440_v45 = vrot.slane %v3047_v40, 1  ;;  %v3063_v46 = vld [vmem:[%s2948_s9 + $0x98] sm:$0xff]  ;;  %v3066_v47 = vld [vmem:[%s2948_s9 + $0xa0] sm:$0x3] }
  0x24   : > { %604 = vrot.lane.b32.xlu0 %v419_v20, %s2843_s10  ;;  %5062 = vst [vmem:[#allocation8_spill] sm:$0xff] %v3054_v41  ;;  %v3059_v44 = vsel %vm414_vm0, %v435_v37, %v436_v34  ;;  %v446_v50 = vrot.slane %v3063_v46, 1  ;;  %v448_v51 = vrot.slane %v3066_v47, 1  ;;  %v445_v53 = vrot.slane %v3069_v48, 1  ;;  %v3085_v54 = vld [vmem:[%s2948_s9 + $0xb0] sm:$0xff]  ;;  %v3091_v56 = vld [vmem:[%s2948_s9 + $0xa8] sm:$0xff] }
  0x25   : > { %5063 = vst [vmem:[#allocation9_spill] sm:$0xff] %v3059_v44  ;;  %v3076_v49 = vsel %vm414_vm0, %v441_v42, %v443_v43  ;;  %v3081_v52 = vsel %vm414_vm0, %v440_v45, %v441_v42  ;;  %v3088_v55 = vld [vmem:[%s2948_s9 + $0xb8] sm:$0x3]  ;;  %v451_v58 = vrot.slane %v3085_v54, 1  ;;  %v450_v61 = vrot.slane %v3091_v56, 1  ;;  %v3107_v62 = vld [vmem:[%s2948_s9 + $0xc8] sm:$0xff] }
  0x26   : > { %5064 = vst [vmem:[#allocation10_spill] sm:$0xff] %v3076_v49  ;;  %5065 = vst [vmem:[#allocation11_spill] sm:$0xff] %v3081_v52  ;;  %v3098_v57 = vsel %vm414_vm0, %v446_v50, %v448_v51  ;;  %v453_v59 = vrot.slane %v3088_v55, 1  ;;  %v3103_v60 = vsel %vm414_vm0, %v445_v53, %v446_v50  ;;  %v3110_v63 = vld [vmem:[%s2948_s9 + $0xd0] sm:$0x3]  ;;  %v3113_v3 = vld [vmem:[%s2948_s9 + $0xc0] sm:$0xff] }
  0x27   : > { %612 = vrot.lane.b32.xlu1 %v3010_v25, %s2843_s10  ;;  %5066 = vst [vmem:[#allocation12_spill] sm:$0xff] %v3098_v57  ;;  %5067 = vst [vmem:[#allocation13_spill] sm:$0xff] %v3103_v60  ;;  %v456_v6 = vrot.slane %v3107_v62, 1  ;;  %v458_v8 = vrot.slane %v3110_v63, 1  ;;  %v3125_v9 = vsel %vm414_vm0, %v450_v61, %v451_v58  ;;  %v455_v13 = vrot.slane %v3113_v3, 1  ;;  %v3129_v16 = vld [vmem:[%s2948_s9 + $0xe0] sm:$0xff] }
  0x28   : > { %610 = vrot.lane.b32.xlu0 %v3015_v28, %s2843_s10  ;;  %v3120_v4 = vsel %vm414_vm0, %v451_v58, %v453_v59  ;;  %5069 = vst [vmem:[#allocation15_spill] sm:$0xff] %v3125_v9  ;;  %v3132_v18 = vld [vmem:[%s2948_s9 + $0xe8] sm:$0x3]  ;;  %v3135_v19 = vld [vmem:[%s2948_s9 + $0xd8] sm:$0xff]  ;;  %v461_v21 = vrot.slane %v3129_v16, 1  ;;  %v3157_v37 = vld [vmem:[%s2948_s9 + $0xf0] sm:$0xff] }
  0x29   : > { %5068 = vst [vmem:[#allocation14_spill] sm:$0xff] %v3120_v4  ;;  %v3142_v20 = vsel %vm414_vm0, %v456_v6, %v458_v8  ;;  %v463_v26 = vrot.slane %v3132_v18, 1  ;;  %v3147_v27 = vsel %vm414_vm0, %v455_v13, %v456_v6  ;;  %v460_v29 = vrot.slane %v3135_v19, 1  ;;  %v3151_v34 = vld [vmem:[%s2948_s9 + $0xf8] sm:$0xff]  ;;  %v3154_v35 = vld [vmem:[%s2948_s9 + $0x100] sm:$0x3] }
  0x2a   : > { %5070 = vst [vmem:[#allocation16_spill] sm:$0xff] %v3142_v20  ;;  %5071 = vst [vmem:[#allocation17_spill] sm:$0xff] %v3147_v27  ;;  %v466_v43 = vrot.slane %v3151_v34, 1  ;;  %v468_v45 = vrot.slane %v3154_v35, 1  ;;  %v465_v51 = vrot.slane %v3157_v37, 1  ;;  %v3173_v53 = vld [vmem:[%s2948_s9 + $0x110] sm:$0xff] }
  0x2b   : > { %616 = vrot.lane.b32.xlu1 %v3032_v33, %s2843_s10  ;;  %v3164_v42 = vsel %vm414_vm0, %v461_v21, %v463_v26  ;;  %v3169_v50 = vsel %vm414_vm0, %v460_v29, %v461_v21  ;;  %v3176_v58 = vld [vmem:[%s2948_s9 + $0x118] sm:$0x3]  ;;  %v3179_v59 = vld [vmem:[%s2948_s9 + $0x108] sm:$0xff]  ;;  %v471_v6 = vrot.slane %v3173_v53, 1  ;;  %v3198_v29 = vld [vmem:[%s2948_s9 + $0x130] sm:$0x3] }
  0x2c   : > { %614 = vrot.lane.b32.xlu0 %v3037_v36, %s2843_s10  ;;  %5072 = vst [vmem:[#allocation18_spill] sm:$0xff] %v3164_v42  ;;  %5073 = vst [vmem:[#allocation19_spill] sm:$0xff] %v3169_v50  ;;  %v3186_v61 = vsel %vm414_vm0, %v466_v43, %v468_v45  ;;  %v473_v8 = vrot.slane %v3176_v58, 1  ;;  %v3191_v13 = vsel %vm414_vm0, %v465_v51, %v466_v43  ;;  %v470_v21 = vrot.slane %v3179_v59, 1  ;;  %v3195_v26 = vld [vmem:[%s2948_s9 + $0x128] sm:$0xff] }
  0x2d   : > { %5074 = vst [vmem:[#allocation20_spill] sm:$0xff] %v3186_v61  ;;  %5075 = vst [vmem:[#allocation21_spill] sm:$0xff] %v3191_v13  ;;  %v476_v43 = vrot.slane %v3195_v26, 1  ;;  %v478_v51 = vrot.slane %v3198_v29, 1 }
  0x2e   : > { %v3208_v45 = vsel %vm414_vm0, %v471_v6, %v473_v8 }
  0x2f   : > { %620 = vrot.lane.b32.xlu1 %v3054_v41, %s2843_s10  ;;  %5076 = vst [vmem:[#allocation22_spill] sm:$0xff] %v3208_v45  ;;  %v3230_v8 = vsel %vm414_vm0, %v476_v43, %v478_v51  ;;  %v3264_v41 = vld [vmem:[%s2948_s9 + $0x178] sm:$0x3] }
  0x30   : > { %618 = vrot.lane.b32.xlu0 %v3059_v44, %s2843_s10  ;;  %5078 = vst [vmem:[#allocation24_spill] sm:$0xff] %v3230_v8 }
  0x33   : > { %624 = vrot.lane.b32.xlu1 %v3076_v49, %s2843_s10 }
  0x34   : > { %622 = vrot.lane.b32.xlu0 %v3081_v52, %s2843_s10  ;;  %v3261_v52 = vld [vmem:[%s2948_s9 + $0x170] sm:$0xff] }
  0x37   : > { %628 = vrot.lane.b32.xlu1 %v3098_v57, %s2843_s10  ;;  %v3239_v57 = vld [vmem:[%s2948_s9 + $0x158] sm:$0xff] }
  0x38   : > { %626 = vrot.lane.b32.xlu0 %v3103_v60, %s2843_s10 }
  0x3b   : > { %632 = vrot.lane.b32.xlu1 %v3120_v4, %s2843_s10 }
  0x3c   : > { %630 = vrot.lane.b32.xlu0 %v3125_v9, %s2843_s10 }
  0x3f   : > { %636 = vrot.lane.b32.xlu1 %v3142_v20, %s2843_s10 }
  0x40   : > { %634 = vrot.lane.b32.xlu0 %v3147_v27, %s2843_s10  ;;  %v3217_v27 = vld [vmem:[%s2948_s9 + $0x140] sm:$0xff] }
  0x43   : > { %640 = vrot.lane.b32.xlu1 %v3164_v42, %s2843_s10  ;;  %v3201_v42 = vld [vmem:[%s2948_s9 + $0x120] sm:$0xff] }
  0x44   : > { %638 = vrot.lane.b32.xlu0 %v3169_v50, %s2843_s10  ;;  %v3213_v50 = vsel %vm414_vm0, %v470_v21, %v471_v6  ;;  %v475_v20 = vrot.slane %v3201_v42, 1  ;;  %v481_v6 = vrot.slane %v3217_v27, 1 }
  0x45   : > { %5077 = vst [vmem:[#allocation23_spill] sm:$0xff] %v3213_v50 }
  0x46   : > { %v3235_v4 = vsel %vm414_vm0, %v475_v20, %v476_v43  ;;  %v486_v20 = vrot.slane %v3239_v57, 1 }
  0x47   : > { %644 = vrot.lane.b32.xlu1 %v3186_v61, %s2843_s10  ;;  %v3220_v61 = vld [vmem:[%s2948_s9 + $0x148] sm:$0x3]  ;;  %5079 = vst [vmem:[#allocation25_spill] sm:$0xff] %v3235_v4 }
  0x48   : > { %642 = vrot.lane.b32.xlu0 %v3191_v13, %s2843_s10  ;;  %v3223_v13 = vld [vmem:[%s2948_s9 + $0x138] sm:$0xff]  ;;  %v483_v21 = vrot.slane %v3220_v61, 1 }
  0x49   : > { %v480_v9 = vrot.slane %v3223_v13, 1 }
  0x4a   : > { %v3252_v51 = vsel %vm414_vm0, %v481_v6, %v483_v21 }
  0x4b   : > { %648 = vrot.lane.b32.xlu1 %v3208_v45, %s2843_s10  ;;  %v3242_v45 = vld [vmem:[%s2948_s9 + $0x160] sm:$0x3]  ;;  %5080 = vst [vmem:[#allocation26_spill] sm:$0xff] %v3252_v51  ;;  %v3257_v60 = vsel %vm414_vm0, %v480_v9, %v481_v6  ;;  %v491_v9 = vrot.slane %v3261_v52, 1  ;;  %v493_v6 = vrot.slane %v3264_v41, 1 }
  0x4c   : > { %646 = vrot.lane.b32.xlu0 %v3213_v50, %s2843_s10  ;;  %v3245_v50 = vld [vmem:[%s2948_s9 + $0x150] sm:$0xff]  ;;  %v488_v43 = vrot.slane %v3242_v45, 1  ;;  %5081 = vst [vmem:[#allocation27_spill] sm:$0xff] %v3257_v60 }
  0x4d   : > { %v485_v49 = vrot.slane %v3245_v50, 1 }
  0x4e   : > { %v3274_v21 = vsel %vm414_vm0, %v486_v20, %v488_v43  ;;  %v497_v43 = vrot.slane %v2962_v5, 2  ;;  %v534_v5 = vrot.slane %v3088_v55, 2 }
  0x4f   : > { %652 = vrot.lane.b32.xlu1 %v3230_v8, %s2843_s10  ;;  %v3267_v8 = vld [vmem:[%s2948_s9 + $0x168] sm:$0xff]  ;;  %5082 = vst [vmem:[#allocation28_spill] sm:$0xff] %v3274_v21 }
  0x50   : > { %650 = vrot.lane.b32.xlu0 %v3235_v4, %s2843_s10  ;;  %v3279_v4 = vsel %vm414_vm0, %v485_v49, %v486_v20  ;;  %v490_v44 = vrot.slane %v3267_v8, 1  ;;  %v496_v49 = vrot.slane %v2957_v2, 2  ;;  %v539_v2 = vrot.slane %v3110_v63, 2 }
  0x51   : > { %5083 = vst [vmem:[#allocation29_spill] sm:$0xff] %v3279_v4 }
  0x52   : > { %v3292_v33 = vsel %vm414_vm0, %v490_v44, %v491_v9  ;;  %v501_v44 = vrot.slane %v2951_v0, 2 }
  0x53   : > { %656 = vrot.lane.b32.xlu1 %v3252_v51, %s2843_s10  ;;  %v3287_v51 = vsel %vm414_vm0, %v491_v9, %v493_v6  ;;  %5085 = vst [vmem:[#allocation31_spill] sm:$0xff] %v3292_v33  ;;  %v502_v6 = vrot.slane %v2954_v1, 2 }
  0x54   : > { %654 = vrot.lane.b32.xlu0 %v3257_v60, %s2843_s10  ;;  %5084 = vst [vmem:[#allocation30_spill] sm:$0xff] %v3287_v51  ;;  %v499_v60 = vrot.slane %v2971_v10, 2  ;;  %v498_v10 = vsel %vm495_vm1, %v496_v49, %v497_v43  ;;  %v514_v49 = vrot.slane %v3001_v23, 2 }
  0x56   : > { %v500_v20 = vsel %vm495_vm1, %v497_v43, %v499_v60  ;;  %v509_v60 = vrot.slane %v2981_v14, 2 }
  0x57   : > { %660 = vrot.lane.b32.xlu1 %v3274_v21, %s2843_s10  ;;  %v504_v21 = vrot.slane %v2966_v7, 2  ;;  %v506_v7 = vrot.slane %v2984_v15, 2 }
  0x58   : > { %658 = vrot.lane.b32.xlu0 %v3279_v4, %s2843_s10  ;;  %v529_v4 = vrot.slane %v3066_v47, 2 }
  0x59   : > { %v3307_v9 = vsel %vm495_vm1, %v502_v6, %v504_v21  ;;  %v512_v21 = vrot.slane %v2998_v22, 2 }
  0x5b   : > { %664 = vrot.lane.b32.xlu1 %v3287_v51, %s2843_s10  ;;  %v507_v51 = vrot.slane %v2974_v11, 2 }
  0x5c   : > { %662 = vrot.lane.b32.xlu0 %v3292_v33, %s2843_s10  ;;  %v3312_v33 = vsel %vm495_vm1, %v501_v44, %v502_v6  ;;  %v3333_v6 = vsel %vm495_vm1, %v512_v21, %v514_v49  ;;  %v519_v44 = vrot.slane %v3022_v31, 2  ;;  %v524_v49 = vrot.slane %v3044_v39, 2  ;;  %s2852_s10 = smov [#allocation2]  }
  0x5d   : > { %v3320_v43 = vsel %vm495_vm1, %v507_v51, %v509_v60  ;;  %v3325_v14 = vsel %vm495_vm1, %v506_v7, %v507_v51  ;;  %v516_v51 = vrot.slane %v3025_v32, 2  ;;  %v522_v7 = vrot.slane %v3041_v38, 2 }
  0x5f   : > { %700 = vrot.lane.b32.xlu1 %v500_v20, %s2844_s11  ;;  %v511_v20 = vrot.slane %v3004_v24, 2 }
  0x60   : > { %698 = vrot.lane.b32.xlu0 %v498_v10, %s2844_s11  ;;  %v517_v10 = vrot.slane %v3019_v30, 2 }
  0x61   : > { %v3338_v23 = vsel %vm495_vm1, %v511_v20, %v512_v21  ;;  %v521_v21 = vrot.slane %v3047_v40, 2  ;;  %v3359_v20 = vsel %vm495_vm1, %v522_v7, %v524_v49  ;;  %v532_v49 = vrot.slane %v3085_v54, 2 }
  0x62   : > { %v3346_v60 = vsel %vm495_vm1, %v517_v10, %v519_v44  ;;  %v3351_v31 = vsel %vm495_vm1, %v516_v51, %v517_v10  ;;  %v527_v44 = vrot.slane %v3063_v46, 2  ;;  %v526_v10 = vrot.slane %v3069_v48, 2 }
  0x63   : > { %704 = vrot.lane.b32.xlu1 %v3307_v9, %s2844_s11  ;;  %v3364_v39 = vsel %vm495_vm1, %v521_v21, %v522_v7  ;;  %v531_v7 = vrot.slane %v3091_v56, 2  ;;  %v3385_v21 = vsel %vm495_vm1, %v532_v49, %v534_v5  ;;  %v542_v5 = vrot.slane %v3129_v16, 2 }
  0x64   : > { %702 = vrot.lane.b32.xlu0 %v3312_v33, %s2844_s11  ;;  %v3372_v51 = vsel %vm495_vm1, %v527_v44, %v529_v4  ;;  %v3377_v47 = vsel %vm495_vm1, %v526_v10, %v527_v44  ;;  %5087 = vst [vmem:[#allocation33_spill] sm:$0xff] %v3385_v21  ;;  %v537_v4 = vrot.slane %v3107_v62, 2  ;;  %v536_v44 = vrot.slane %v3113_v3, 2 }
  0x65   : > { %5086 = vst [vmem:[#allocation32_spill] sm:$0xff] %v3372_v51  ;;  %v3390_v55 = vsel %vm495_vm1, %v531_v7, %v532_v49  ;;  %v541_v49 = vrot.slane %v3135_v19, 2 }
  0x66   : > { %v3398_v10 = vsel %vm495_vm1, %v537_v4, %v539_v2  ;;  %v3403_v63 = vsel %vm495_vm1, %v536_v44, %v537_v4  ;;  %v547_v2 = vrot.slane %v3151_v34, 2  ;;  %v546_v4 = vrot.slane %v3157_v37, 2 }
  0x67   : > { %708 = vrot.lane.b32.xlu1 %v3320_v43, %s2844_s11  ;;  %5088 = vst [vmem:[#allocation34_spill] sm:$0xff] %v3398_v10 }
  0x68   : > { %706 = vrot.lane.b32.xlu0 %v3325_v14, %s2844_s11 }
  0x6b   : > { %712 = vrot.lane.b32.xlu1 %v3333_v6, %s2844_s11 }
  0x6c   : > { %710 = vrot.lane.b32.xlu0 %v3338_v23, %s2844_s11 }
  0x6f   : > { %716 = vrot.lane.b32.xlu1 %v3346_v60, %s2844_s11 }
  0x70   : > { %714 = vrot.lane.b32.xlu0 %v3351_v31, %s2844_s11 }
  0x73   : > { %720 = vrot.lane.b32.xlu1 %v3359_v20, %s2844_s11 }
  0x74   : > { %718 = vrot.lane.b32.xlu0 %v3364_v39, %s2844_s11 }
  0x77   : > { %724 = vrot.lane.b32.xlu1 %v3372_v51, %s2844_s11  ;;  %v544_v51 = vrot.slane %v3132_v18, 2  ;;  %v3416_v18 = vsel %vm495_vm1, %v541_v49, %v542_v5 }
  0x78   : > { %722 = vrot.lane.b32.xlu0 %v3377_v47, %s2844_s11 }
  0x79   : > { %v3411_v7 = vsel %vm495_vm1, %v542_v5, %v544_v51  ;;  %v552_v51 = vrot.slane %v3173_v53, 2  ;;  %v551_v5 = vrot.slane %v3179_v59, 2  ;;  %v559_v53 = vrot.slane %v3198_v29, 2 }
  0x7b   : > { %728 = vrot.lane.b32.xlu1 %v3385_v21, %s2844_s11  ;;  %v549_v21 = vrot.slane %v3154_v35, 2  ;;  %v3429_v35 = vsel %vm495_vm1, %v546_v4, %v547_v2 }
  0x7c   : > { %726 = vrot.lane.b32.xlu0 %v3390_v55, %s2844_s11 }
  0x7d   : > { %v3424_v44 = vsel %vm495_vm1, %v547_v2, %v549_v21  ;;  %v557_v21 = vrot.slane %v3195_v26, 2  ;;  %v556_v2 = vrot.slane %v3201_v42, 2  ;;  %v564_v26 = vrot.slane %v3220_v61, 2 }
  0x7f   : > { %732 = vrot.lane.b32.xlu1 %v3398_v10, %s2844_s11  ;;  %v554_v10 = vrot.slane %v3176_v58, 2  ;;  %v3442_v58 = vsel %vm495_vm1, %v551_v5, %v552_v51  ;;  %v3450_v4 = vsel %vm495_vm1, %v557_v21, %v559_v53  ;;  %v3455_v29 = vsel %vm495_vm1, %v556_v2, %v557_v21 }
  0x80   : > { %730 = vrot.lane.b32.xlu0 %v3403_v63, %s2844_s11  ;;  %5089 = vst [vmem:[#allocation35_spill] sm:$0xff] %v3450_v4  ;;  %v567_v5 = vrot.slane %v3239_v57, 2  ;;  %v572_v57 = vrot.slane %v3261_v52, 2 }
  0x81   : > { %v3437_v49 = vsel %vm495_vm1, %v552_v51, %v554_v10  ;;  %v562_v10 = vrot.slane %v3217_v27, 2  ;;  %v561_v51 = vrot.slane %v3223_v13, 2  ;;  %v569_v27 = vrot.slane %v3242_v45, 2 }
  0x82   : > { %v566_v13 = vrot.slane %v3245_v50, 2  ;;  %v574_v45 = vrot.slane %v3264_v41, 2  ;;  %v571_v50 = vrot.slane %v3267_v8, 2 }
  0x83   : > { %736 = vrot.lane.b32.xlu1 %v3411_v7, %s2844_s11  ;;  %v3463_v42 = vsel %vm495_vm1, %v562_v10, %v564_v26  ;;  %v3470_v61 = vsel %vm495_vm1, %v561_v51, %v562_v10  ;;  %v3480_v2 = vsel %vm495_vm1, %v567_v5, %v569_v27 }
  0x84   : > { %734 = vrot.lane.b32.xlu0 %v3416_v18, %s2844_s11  ;;  %5090 = vst [vmem:[#allocation36_spill] sm:$0xff] %v3463_v42  ;;  %5091 = vst [vmem:[#allocation37_spill] sm:$0xff] %v3470_v61  ;;  %v3487_v10 = vsel %vm495_vm1, %v566_v13, %v567_v5  ;;  %v3497_v27 = vsel %vm495_vm1, %v572_v57, %v574_v45  ;;  %v3502_v41 = vsel %vm495_vm1, %v571_v50, %v572_v57 }
  0x85   : > { %5092 = vst [vmem:[#allocation38_spill] sm:$0xff] %v3480_v2  ;;  %5093 = vst [vmem:[#allocation39_spill] sm:$0xff] %v3487_v10 }
  0x86   : > { %5094 = vst [vmem:[#allocation40_spill] sm:$0xff] %v3497_v27  ;;  %5095 = vst [vmem:[#allocation41_spill] sm:$0xff] %v3502_v41 }
  0x87   : > { %740 = vrot.lane.b32.xlu1 %v3424_v44, %s2844_s11 }
  0x88   : > { %738 = vrot.lane.b32.xlu0 %v3429_v35, %s2844_s11 }
  0x8b   : > { %744 = vrot.lane.b32.xlu1 %v3437_v49, %s2844_s11 }
  0x8c   : > { %742 = vrot.lane.b32.xlu0 %v3442_v58, %s2844_s11 }
  0x8f   : > { %748 = vrot.lane.b32.xlu1 %v3450_v4, %s2844_s11 }
  0x90   : > { %746 = vrot.lane.b32.xlu0 %v3455_v29, %s2844_s11 }
  0x91   : > { %v3467_v53 = vpop.permute.xlu1 %606 }
  0x92   : > { %v3473_v21 = vpop.permute.xlu0 %602 }
  0x93   : > { %752 = vrot.lane.b32.xlu1 %v3463_v42, %s2844_s11 }
  0x94   : > { %750 = vrot.lane.b32.xlu0 %v3470_v61, %s2844_s11 }
  0x95   : > { %v3484_v26 = vpop.permute.xlu1 %608 }
  0x96   : > { %v3490_v51 = vpop.permute.xlu0 %604 }
  0x97   : > { %756 = vrot.lane.b32.xlu1 %v3480_v2, %s2844_s11 }
  0x98   : > { %754 = vrot.lane.b32.xlu0 %v3487_v10, %s2844_s11 }
  0x99   : > { %v3499_v52 = vpop.permute.xlu1 %612 }
  0x9a   : > { %v3504_v5 = vpop.permute.xlu0 %610 }
  0x9b   : > { %760 = vrot.lane.b32.xlu1 %v3497_v27, %s2844_s11 }
  0x9c   : > { %758 = vrot.lane.b32.xlu0 %v3502_v41, %s2844_s11 }
  0x9d   : > { %v3510_v8 = vpop.permute.xlu1 %616 }
  0x9e   : > { %v3512_v13 = vpop.permute.xlu0 %614 }
  0x9f   : > { %796 = vrot.lane.b32.xlu1 %v2954_v1, %s2845_s12 }
  0xa0   : > { %794 = vrot.lane.b32.xlu0 %v2951_v0, %s2845_s12 }
  0xa1   : > { %v3518_v57 = vpop.permute.xlu1 %620 }
  0xa2   : > { %v3520_v45 = vpop.permute.xlu0 %618 }
  0xa3   : > { %800 = vrot.lane.b32.xlu1 %v2974_v11, %s2845_s12 }
  0xa4   : > { %798 = vrot.lane.b32.xlu0 %v2984_v15, %s2845_s12 }
  0xa5   : > { %v3526_v50 = vpop.permute.xlu1 %624 }
  0xa6   : > { %v3528_v27 = vpop.permute.xlu0 %622 }
  0xa7   : > { %804 = vrot.lane.b32.xlu1 %v2998_v22, %s2845_s12 }
  0xa8   : > { %802 = vrot.lane.b32.xlu0 %v3004_v24, %s2845_s12 }
  0xa9   : > { %v3534_v0 = vpop.permute.xlu1 %628 }
  0xaa   : > { %5096 = vst [vmem:[#allocation42_spill] sm:$0xff] %v3534_v0  ;;  %v3536_v1 = vpop.permute.xlu0 %626 }
  0xab   : > { %5097 = vst [vmem:[#allocation43_spill] sm:$0xff] %v3536_v1  ;;  %808 = vrot.lane.b32.xlu1 %v3019_v30, %s2845_s12  ;;  %v5119_v1 = vld [vmem:[#allocation7_spill] sm:$0xff] }
  0xac   : > { %806 = vrot.lane.b32.xlu0 %v3025_v32, %s2845_s12 }
  0xad   : > { %v3542_v41 = vpop.permute.xlu1 %632 }
  0xae   : > { %5098 = vst [vmem:[#allocation44_spill] sm:$0xff] %v3542_v41  ;;  %v3544_v2 = vpop.permute.xlu0 %630 }
  0xaf   : > { %5099 = vst [vmem:[#allocation45_spill] sm:$0xff] %v3544_v2  ;;  %812 = vrot.lane.b32.xlu1 %v3041_v38, %s2845_s12 }
  0xb0   : > { %810 = vrot.lane.b32.xlu0 %v3047_v40, %s2845_s12 }
  0xb1   : > { %v3550_v10 = vpop.permute.xlu1 %636 }
  0xb2   : > { %5100 = vst [vmem:[#allocation46_spill] sm:$0xff] %v3550_v10  ;;  %v3552_v42 = vpop.permute.xlu0 %634 }
  0xb3   : > { %5101 = vst [vmem:[#allocation47_spill] sm:$0xff] %v3552_v42  ;;  %816 = vrot.lane.b32.xlu1 %v3063_v46, %s2845_s12 }
  0xb4   : > { %814 = vrot.lane.b32.xlu0 %v3069_v48, %s2845_s12 }
  0xb5   : > { %v3558_v0 = vpop.permute.xlu1 %640 }
  0xb6   : > { %5102 = vst [vmem:[#allocation48_spill] sm:$0xff] %v3558_v0  ;;  %v3560_v41 = vpop.permute.xlu0 %638 }
  0xb7   : > { %5103 = vst [vmem:[#allocation49_spill] sm:$0xff] %v3560_v41  ;;  %820 = vrot.lane.b32.xlu1 %v3085_v54, %s2845_s12 }
  0xb8   : > { %818 = vrot.lane.b32.xlu0 %v3091_v56, %s2845_s12 }
  0xb9   : > { %v3566_v2 = vpop.permute.xlu1 %644 }
  0xba   : > { %5104 = vst [vmem:[#allocation50_spill] sm:$0xff] %v3566_v2  ;;  %v3568_v10 = vpop.permute.xlu0 %642 }
  0xbb   : > { %5105 = vst [vmem:[#allocation51_spill] sm:$0xff] %v3568_v10  ;;  %824 = vrot.lane.b32.xlu1 %v3107_v62, %s2845_s12 }
  0xbc   : > { %822 = vrot.lane.b32.xlu0 %v3113_v3, %s2845_s12 }
  0xbd   : > { %v3574_v42 = vpop.permute.xlu1 %648 }
  0xbe   : > { %5106 = vst [vmem:[#allocation52_spill] sm:$0xff] %v3574_v42  ;;  %v3576_v0 = vpop.permute.xlu0 %646 }
  0xbf   : > { %5107 = vst [vmem:[#allocation53_spill] sm:$0xff] %v3576_v0  ;;  %828 = vrot.lane.b32.xlu1 %v3129_v16, %s2845_s12 }
  0xc0   : > { %826 = vrot.lane.b32.xlu0 %v3135_v19, %s2845_s12 }
  0xc1   : > { %v3582_v41 = vpop.permute.xlu1 %652 }
  0xc2   : > { %5108 = vst [vmem:[#allocation54_spill] sm:$0xff] %v3582_v41  ;;  %v3584_v2 = vpop.permute.xlu0 %650  ;;  %v1638_v41 = vld [vmem:[%s4980_s1 + $0x20] sm:$0xf] }
  0xc3   : > { %5109 = vst [vmem:[#allocation55_spill] sm:$0xff] %v3584_v2  ;;  %832 = vrot.lane.b32.xlu1 %v3151_v34, %s2845_s12  ;;  %2602 = vmatprep.subr.msk.mxu0 %vm1736_vm2, %v1638_v41 }
  0xc4   : > { %830 = vrot.lane.b32.xlu0 %v3157_v37, %s2845_s12  ;;  %2660 = vmatprep.subr.msk.mxu1 %vm1736_vm2, %v1638_v41 }
  0xc5   : > { %v3590_v10 = vpop.permute.xlu1 %656  ;;  %2603 = vmatpush3.msk.msra.mxu0 %vm1736_vm2, %v1638_v41  ;;  %2665 = vmatpush3.msk.msra.mxu1 %vm1736_vm2, %v1638_v41 }
  0xc6   : > { %5110 = vst [vmem:[#allocation56_spill] sm:$0xff] %v3590_v10  ;;  %v3592_v42 = vpop.permute.xlu0 %654 }
  0xc7   : > { %5111 = vst [vmem:[#allocation57_spill] sm:$0xff] %v3592_v42  ;;  %890 = vrot.lane.b32.xlu1 %v2977_v12, %s2846_s13  ;;  %v1637_v12 = vld [vmem:[%s4980_s1 + $0x18] sm:$0xff] }
  0xc8   : > { %834 = vrot.lane.b32.xlu0 %v3179_v59, %s2845_s12  ;;  %2604 = vmatprep.subr.mxu0 %v1637_v12 }
  0xc9   : > { %v3601_v2 = vpop.permute.xlu1 %660  ;;  %2605 = vmatpush3.msra.mxu0 %v1637_v12  ;;  %2661 = vmatprep.subr.mxu1 %v1637_v12 }
  0xca   : > { %5112 = vst [vmem:[#allocation58_spill] sm:$0xff] %v3601_v2  ;;  %v3603_v0 = vpop.permute.xlu0 %658  ;;  %v1636_v2 = vld [vmem:[%s4980_s1 + $0x10] sm:$0xff]  ;;  %2666 = vmatpush3.msra.mxu1 %v1637_v12 }
  0xcb   : > { %5113 = vst [vmem:[#allocation59_spill] sm:$0xff] %v3603_v0  ;;  %986 = vrot.lane.b32.xlu1 %v3312_v33, %s2847_s16  ;;  %2606 = vmatprep.subr.mxu0 %v1636_v2  ;;  %v1635_v33 = vld [vmem:[%s4980_s1 + $0x8] sm:$0xff] }
  0xcc   : > { %892 = vrot.lane.b32.xlu0 %v2991_v17, %s2846_s13  ;;  %2607 = vmatpush3.msra.mxu0 %v1636_v2  ;;  %v1634_v17 = vld [vmem:[%s4980_s1] sm:$0xff] }
  0xcd   : > { %v3615_v10 = vpop.permute.xlu1 %664  ;;  %2608 = vmatprep.subr.mxu0 %v1635_v33  ;;  %2662 = vmatprep.subr.mxu1 %v1636_v2 }
  0xce   : > { %5114 = vst [vmem:[#allocation60_spill] sm:$0xff] %v3615_v10  ;;  %v3617_v41 = vpop.permute.xlu0 %662  ;;  %2609 = vmatpush3.msra.mxu0 %v1635_v33  ;;  %2667 = vmatpush3.msra.mxu1 %v1636_v2 }
  0xcf   : > { %5115 = vst [vmem:[#allocation61_spill] sm:$0xff] %v3617_v41  ;;  %1082 = vrot.lane.b32.xlu1 %v2984_v15, %s2848_s8  ;;  %2610 = vmatprep.subr.mxu0 %v1634_v17 }
  0xd0   : > { %988 = vrot.lane.b32.xlu0 %v3307_v9, %s2847_s16  ;;  %2611 = vmatpush3.msra.mxu0 %v1634_v17 }
  0xd1   : > { %v3629_v41 = vpop.permute.xlu1 %700  ;;  %2663 = vmatprep.subr.mxu1 %v1635_v33 }
  0xd2   : > { %v3631_v10 = vpop.permute.xlu0 %698  ;;  %2668 = vmatpush3.msra.mxu1 %v1635_v33 }
  0xd3   : > { %1178 = vrot.lane.b32.xlu1 %v3015_v28, %s2849_s14  ;;  %2664 = vmatprep.subr.mxu1 %v1634_v17 }
  0xd4   : > { %1084 = vrot.lane.b32.xlu0 %v2974_v11, %s2848_s8  ;;  %2669 = vmatpush3.msra.mxu1 %v1634_v17 }
  0xd5   : > { %v3637_v15 = vpop.permute.xlu1 %704 }
  0xd6   : > { %v3639_v9 = vpop.permute.xlu0 %702 }
  0xd7   : > { %1180 = vrot.lane.b32.xlu1 %v3010_v25, %s2849_s14 }
  0xd8   : > { %894 = vrot.lane.b32.xlu0 %v3015_v28, %s2846_s13 }
  0xd9   : > { %v3645_v2 = vpop.permute.xlu1 %708 }
  0xda   : > { %v3647_v12 = vpop.permute.xlu0 %706 }
  0xdb   : > { %896 = vrot.lane.b32.xlu1 %v3010_v25, %s2846_s13 }
  0xdc   : > { %1274 = vrot.lane.b32.xlu0 %v3325_v14, %s2850_s15 }
  0xdd   : > { %v3653_v11 = vpop.permute.xlu1 %712 }
  0xde   : > { %v3655_v33 = vpop.permute.xlu0 %710 }
  0xdf   : > { %1276 = vrot.lane.b32.xlu1 %v3320_v43, %s2850_s15 }
  0xe0   : > { %990 = vrot.lane.b32.xlu0 %v3325_v14, %s2847_s16 }
  0xe1   : > { %v3661_v28 = vpop.permute.xlu1 %716 }
  0xe2   : > { %v3663_v17 = vpop.permute.xlu0 %714 }
  0xe3   : > { %1086 = vrot.lane.b32.xlu1 %v3004_v24, %s2848_s8 }
  0xe4   : > { %992 = vrot.lane.b32.xlu0 %v3320_v43, %s2847_s16 }
  0xe5   : > { %v3669_v25 = vpop.permute.xlu1 %720 }
  0xe6   : > { %5116 = vst [vmem:[#allocation62_spill] sm:$0xff] %v3669_v25  ;;  %v3671_v0 = vpop.permute.xlu0 %718 }
  0xe7   : > { %1182 = vrot.lane.b32.xlu1 %v3037_v36, %s2849_s14 }
  0xe8   : > { %1088 = vrot.lane.b32.xlu0 %v2998_v22, %s2848_s8 }
  0xe9   : > { %v3677_v14 = vpop.permute.xlu1 %724 }
  0xea   : > { %5117 = vst [vmem:[#allocation63_spill] sm:$0xff] %v3677_v14  ;;  %v3679_v42 = vpop.permute.xlu0 %722 }
  0xeb   : > { %5118 = vst [vmem:[#allocation64_spill] sm:$0xff] %v3679_v42  ;;  %1184 = vrot.lane.b32.xlu1 %v5119_v1, %s2849_s14  ;;  %v5149_v42 = vld [vmem:[#allocation32_spill] sm:$0xff] }
  0xec   : > { %898 = vrot.lane.b32.xlu0 %v3037_v36, %s2846_s13 }
  0xed   : > { %v3685_v24 = vpop.permute.xlu1 %728 }
  0xee   : > { %5120 = vst [vmem:[#allocation7_spill] sm:$0xff] %v3685_v24  ;;  %v3687_v43 = vpop.permute.xlu0 %726 }
  0xef   : > { %5121 = vst [vmem:[#allocation65_spill] sm:$0xff] %v3687_v43  ;;  %900 = vrot.lane.b32.xlu1 %v5119_v1, %s2846_s13 }
  0xf0   : > { %1278 = vrot.lane.b32.xlu0 %v3338_v23, %s2850_s15 }
  0xf1   : > { %v3693_v22 = vpop.permute.xlu1 %732 }
  0xf2   : > { %5122 = vst [vmem:[#allocation66_spill] sm:$0xff] %v3693_v22  ;;  %v3695_v14 = vpop.permute.xlu0 %730 }
  0xf3   : > { %5123 = vst [vmem:[#allocation67_spill] sm:$0xff] %v3695_v14  ;;  %1280 = vrot.lane.b32.xlu1 %v3333_v6, %s2850_s15  ;;  %v5128_v14 = vld [vmem:[#allocation9_spill] sm:$0xff] }
  0xf4   : > { %994 = vrot.lane.b32.xlu0 %v3338_v23, %s2847_s16 }
  0xf5   : > { %v3701_v36 = vpop.permute.xlu1 %736 }
  0xf6   : > { %5124 = vst [vmem:[#allocation68_spill] sm:$0xff] %v3701_v36  ;;  %v3703_v24 = vpop.permute.xlu0 %734 }
  0xf7   : > { %5125 = vst [vmem:[#allocation69_spill] sm:$0xff] %v3703_v24  ;;  %1090 = vrot.lane.b32.xlu1 %v3025_v32, %s2848_s8  ;;  %v5131_v24 = vld [vmem:[#allocation8_spill] sm:$0xff] }
  0xf8   : > { %996 = vrot.lane.b32.xlu0 %v3333_v6, %s2847_s16 }
  0xf9   : > { %v3709_v1 = vpop.permute.xlu1 %740 }
  0xfa   : > { %5126 = vst [vmem:[#allocation70_spill] sm:$0xff] %v3709_v1  ;;  %v3711_v22 = vpop.permute.xlu0 %738 }
  0xfb   : > { %5127 = vst [vmem:[#allocation71_spill] sm:$0xff] %v3711_v22  ;;  %1186 = vrot.lane.b32.xlu1 %v5128_v14, %s2849_s14  ;;  %v5144_v22 = vld [vmem:[#allocation12_spill] sm:$0xff] }
  0xfc   : > { %1092 = vrot.lane.b32.xlu0 %v3019_v30, %s2848_s8 }
  0xfd   : > { %v3717_v23 = vpop.permute.xlu1 %744 }
  0xfe   : > { %5129 = vst [vmem:[#allocation9_spill] sm:$0xff] %v3717_v23  ;;  %v3719_v36 = vpop.permute.xlu0 %742 }
  0xff   : > { %5130 = vst [vmem:[#allocation72_spill] sm:$0xff] %v3719_v36  ;;  %1188 = vrot.lane.b32.xlu1 %v5131_v24, %s2849_s14  ;;  %v5142_v36 = vld [vmem:[#allocation13_spill] sm:$0xff] }
 0x100   : > { %902 = vrot.lane.b32.xlu0 %v5128_v14, %s2846_s13 }
 0x101   : > { %v3725_v32 = vpop.permute.xlu1 %748 }
 0x102   : > { %5132 = vst [vmem:[#allocation8_spill] sm:$0xff] %v3725_v32  ;;  %v3727_v6 = vpop.permute.xlu0 %746 }
 0x103   : > { %5133 = vst [vmem:[#allocation73_spill] sm:$0xff] %v3727_v6  ;;  %904 = vrot.lane.b32.xlu1 %v5131_v24, %s2846_s13 }
 0x104   : > { %1282 = vrot.lane.b32.xlu0 %v3351_v31, %s2850_s15 }
 0x105   : > { %v3733_v30 = vpop.permute.xlu1 %752 }
 0x106   : > { %5134 = vst [vmem:[#allocation74_spill] sm:$0xff] %v3733_v30  ;;  %v3735_v23 = vpop.permute.xlu0 %750 }
 0x107   : > { %5135 = vst [vmem:[#allocation75_spill] sm:$0xff] %v3735_v23  ;;  %1284 = vrot.lane.b32.xlu1 %v3346_v60, %s2850_s15  ;;  %v5140_v23 = vld [vmem:[#allocation11_spill] sm:$0xff] }
 0x108   : > { %998 = vrot.lane.b32.xlu0 %v3351_v31, %s2847_s16 }
 0x109   : > { %v3741_v14 = vpop.permute.xlu1 %756 }
 0x10a   : > { %5136 = vst [vmem:[#allocation76_spill] sm:$0xff] %v3741_v14  ;;  %v3743_v32 = vpop.permute.xlu0 %754 }
 0x10b   : > { %5137 = vst [vmem:[#allocation77_spill] sm:$0xff] %v3743_v32  ;;  %1094 = vrot.lane.b32.xlu1 %v3047_v40, %s2848_s8  ;;  %v5141_v32 = vld [vmem:[#allocation10_spill] sm:$0xff] }
 0x10c   : > { %1000 = vrot.lane.b32.xlu0 %v3346_v60, %s2847_s16 }
 0x10d   : > { %v3749_v24 = vpop.permute.xlu1 %760 }
 0x10e   : > { %5138 = vst [vmem:[#allocation78_spill] sm:$0xff] %v3749_v24  ;;  %v3751_v30 = vpop.permute.xlu0 %758 }
 0x10f   : > { %5139 = vst [vmem:[#allocation79_spill] sm:$0xff] %v3751_v30  ;;  %1190 = vrot.lane.b32.xlu1 %v5140_v23, %s2849_s14 }
 0x110   : > { %1096 = vrot.lane.b32.xlu0 %v3041_v38, %s2848_s8 }
 0x111   : > { %v3757_v31 = vpop.permute.xlu1 %796 }
 0x112   : > { %v3759_v14 = vpop.permute.xlu0 %794 }
 0x113   : > { %1192 = vrot.lane.b32.xlu1 %v5141_v32, %s2849_s14 }
 0x114   : > { %906 = vrot.lane.b32.xlu0 %v5140_v23, %s2846_s13 }
 0x115   : > { %v3765_v40 = vpop.permute.xlu1 %800 }
 0x116   : > { %v3767_v60 = vpop.permute.xlu0 %798 }
 0x117   : > { %908 = vrot.lane.b32.xlu1 %v5141_v32, %s2846_s13 }
 0x118   : > { %1286 = vrot.lane.b32.xlu0 %v3364_v39, %s2850_s15 }
 0x119   : > { %v3773_v38 = vpop.permute.xlu1 %804 }
 0x11a   : > { %v3775_v30 = vpop.permute.xlu0 %802 }
 0x11b   : > { %1288 = vrot.lane.b32.xlu1 %v3359_v20, %s2850_s15 }
 0x11c   : > { %1002 = vrot.lane.b32.xlu0 %v3364_v39, %s2847_s16 }
 0x11d   : > { %v3781_v23 = vpop.permute.xlu1 %808 }
 0x11e   : > { %v3783_v24 = vpop.permute.xlu0 %806 }
 0x11f   : > { %1098 = vrot.lane.b32.xlu1 %v3069_v48, %s2848_s8 }
 0x120   : > { %1004 = vrot.lane.b32.xlu0 %v3359_v20, %s2847_s16 }
 0x121   : > { %v3789_v32 = vpop.permute.xlu1 %812 }
 0x122   : > { %v3791_v6 = vpop.permute.xlu0 %810 }
 0x123   : > { %1194 = vrot.lane.b32.xlu1 %v5142_v36, %s2849_s14 }
 0x124   : > { %1100 = vrot.lane.b32.xlu0 %v3063_v46, %s2848_s8 }
 0x125   : > { %v3797_v39 = vpop.permute.xlu1 %816 }
 0x126   : > { %5143 = vst [vmem:[#allocation11_spill] sm:$0xff] %v3797_v39  ;;  %v3799_v1 = vpop.permute.xlu0 %814 }
 0x127   : > { %1196 = vrot.lane.b32.xlu1 %v5144_v22, %s2849_s14 }
 0x128   : > { %910 = vrot.lane.b32.xlu0 %v5142_v36, %s2846_s13 }
 0x129   : > { %v3805_v48 = vpop.permute.xlu1 %820 }
 0x12a   : > { %5145 = vst [vmem:[#allocation10_spill] sm:$0xff] %v3805_v48  ;;  %v3807_v20 = vpop.permute.xlu0 %818 }
 0x12b   : > { %5146 = vst [vmem:[#allocation13_spill] sm:$0xff] %v3807_v20  ;;  %912 = vrot.lane.b32.xlu1 %v5144_v22, %s2846_s13 }
 0x12c   : > { %1290 = vrot.lane.b32.xlu0 %v3377_v47, %s2850_s15 }
 0x12d   : > { %v3813_v46 = vpop.permute.xlu1 %824 }
 0x12e   : > { %5147 = vst [vmem:[#allocation12_spill] sm:$0xff] %v3813_v46  ;;  %v3815_v43 = vpop.permute.xlu0 %822 }
 0x12f   : > { %5148 = vst [vmem:[#allocation80_spill] sm:$0xff] %v3815_v43  ;;  %1292 = vrot.lane.b32.xlu1 %v5149_v42, %s2850_s15  ;;  %v5154_v43 = vld [vmem:[#allocation15_spill] sm:$0xff] }
 0x130   : > { %1006 = vrot.lane.b32.xlu0 %v3377_v47, %s2847_s16 }
 0x131   : > { %v3821_v36 = vpop.permute.xlu1 %828 }
 0x132   : > { %5150 = vst [vmem:[#allocation32_spill] sm:$0xff] %v3821_v36  ;;  %v3823_v48 = vpop.permute.xlu0 %826 }
 0x133   : > { %5151 = vst [vmem:[#allocation81_spill] sm:$0xff] %v3823_v48  ;;  %1102 = vrot.lane.b32.xlu1 %v3091_v56, %s2848_s8  ;;  %v5156_v48 = vld [vmem:[#allocation14_spill] sm:$0xff] }
 0x134   : > { %1008 = vrot.lane.b32.xlu0 %v5149_v42, %s2847_s16 }
 0x135   : > { %v3829_v22 = vpop.permute.xlu1 %832 }
 0x136   : > { %5152 = vst [vmem:[#allocation82_spill] sm:$0xff] %v3829_v22  ;;  %v3831_v46 = vpop.permute.xlu0 %830 }
 0x137   : > { %5153 = vst [vmem:[#allocation83_spill] sm:$0xff] %v3831_v46  ;;  %1198 = vrot.lane.b32.xlu1 %v5154_v43, %s2849_s14 }
 0x138   : > { %1104 = vrot.lane.b32.xlu0 %v3085_v54, %s2848_s8  ;;  %v5157_v54 = vld [vmem:[#allocation33_spill] sm:$0xff] }
 0x139   : > { %v891_v47 = vpop.permute.xlu1 %890 }
 0x13a   : > { %v3837_v36 = vpop.permute.xlu0 %834 }
 0x13b   : > { %5155 = vst [vmem:[#allocation15_spill] sm:$0xff] %v3837_v36  ;;  %1200 = vrot.lane.b32.xlu1 %v5156_v48, %s2849_s14 }
 0x13c   : > { %914 = vrot.lane.b32.xlu0 %v5154_v43, %s2846_s13 }
 0x13d   : > { %v987_v56 = vpop.permute.xlu1 %986 }
 0x13e   : > { %v893_v42 = vpop.permute.xlu0 %892 }
 0x13f   : > { %916 = vrot.lane.b32.xlu1 %v5156_v48, %s2846_s13  ;;  %v5158_v48 = vld [vmem:[#allocation5_spill] sm:$0xff] }
 0x140   : > { %1294 = vrot.lane.b32.xlu0 %v3390_v55, %s2850_s15  ;;  %v1371_v20 = vsel %vm1370_vm3, %v5158_v48, %v3473_v21  ;;  %v5160_v48 = vld [vmem:[#allocation17_spill] sm:$0xff] }
 0x141   : > { %v1083_v22 = vpop.permute.xlu1 %1082  ;;  %v1404_v61 = vsel %vm255_vm4, %v1371_v20, %v3631_v10 }
 0x142   : > { %v989_v46 = vpop.permute.xlu0 %988  ;;  %v1437_v39 = vsel %vm1436_vm5, %v1404_v61, %v3759_v14 }
 0x143   : > { %1296 = vrot.lane.b32.xlu1 %v5157_v54, %s2850_s15  ;;  %v1470_v21 = vsel %vm1469_vm6, %v1437_v39, %v891_v47 }
 0x144   : > { %1010 = vrot.lane.b32.xlu0 %v3390_v55, %s2847_s16  ;;  %v1503_v20 = vsel %vm1502_vm7, %v1470_v21, %v987_v56 }
 0x145   : > { %v1179_v36 = vpop.permute.xlu1 %1178 }
 0x146   : > { %v1085_v43 = vpop.permute.xlu0 %1084 }
 0x147   : > { %1106 = vrot.lane.b32.xlu1 %v3113_v3, %s2848_s8  ;;  %v5159_v3 = vld [vmem:[#allocation6_spill] sm:$0xff] }
 0x148   : > { %1012 = vrot.lane.b32.xlu0 %v5157_v54, %s2847_s16  ;;  %v1372_v4 = vsel %vm1370_vm3, %v5159_v3, %v3490_v51  ;;  %v1536_v51 = vsel %vm1535_vm8, %v1503_v20, %v1083_v22  ;;  %v5162_v3 = vld [vmem:[#allocation34_spill] sm:$0xff] }
 0x149   : > { %v1181_v55 = vpop.permute.xlu1 %1180  ;;  %v1405_v10 = vsel %vm255_vm4, %v1372_v4, %v3629_v41  ;;  %v1569_v47 = vsel %vm1568_vm9, %v1536_v51, %v1179_v36  ;;  %v5161_v41 = vld [vmem:[#allocation16_spill] sm:$0xff] }
 0x14a   : > { %v895_v25 = vpop.permute.xlu0 %894  ;;  %v1438_v61 = vsel %vm1436_vm5, %v1405_v10, %v3757_v31 }
 0x14b   : > { %1202 = vrot.lane.b32.xlu1 %v5160_v48, %s2849_s14  ;;  %v1471_v39 = vsel %vm1469_vm6, %v1438_v61, %v893_v42 }
 0x14c   : > { %1108 = vrot.lane.b32.xlu0 %v3107_v62, %s2848_s8  ;;  %v1504_v4 = vsel %vm1502_vm7, %v1471_v39, %v989_v46  ;;  %v2736_v39 = vld [vmem:[%s2948_s9 + $0x20] sm:$0xff] }
 0x14d   : > { %v897_v14 = vpop.permute.xlu1 %896  ;;  %v1537_v56 = vsel %vm1535_vm8, %v1504_v4, %v1085_v43 }
 0x14e   : > { %v1275_v54 = vpop.permute.xlu0 %1274  ;;  %v1570_v31 = vsel %vm1568_vm9, %v1537_v56, %v1181_v55 }
 0x14f   : > { %1204 = vrot.lane.b32.xlu1 %v5161_v41, %s2849_s14  ;;  %v1602_v62 = vsel %vm1601_vm10, %v1569_v47, %v1275_v54  ;;  %v1374_v47 = vsel %vm1370_vm3, %v2736_v39, %v3484_v26  ;;  %v5163_v54 = vld [vmem:[#allocation19_spill] sm:$0xff]  ;;  %v5165_v39 = vld [vmem:[#allocation21_spill] sm:$0xff] }
 0x150   : > { %918 = vrot.lane.b32.xlu0 %v5160_v48, %s2846_s13  ;;  %2612 = vmatprep.mubr.msk.f32.mxu0 %vm1639_vm11, %v1602_v62  ;;  %v2735_v48 = vld [vmem:[%s2948_s9 + $0x18] sm:$0xff] }
 0x151   : > { %v1277_v22 = vpop.permute.xlu1 %1276  ;;  %v1373_v10 = vsel %vm1370_vm3, %v2735_v48, %v3467_v53  ;;  %v1407_v53 = vsel %vm255_vm4, %v1374_v47, %v3637_v15 }
 0x152   : > { %v1603_v36 = vsel %vm1601_vm10, %v1570_v31, %v1277_v22  ;;  %v991_v42 = vpop.permute.xlu0 %990  ;;  %v1406_v20 = vsel %vm255_vm4, %v1373_v10, %v3639_v9  ;;  %v1440_v9 = vsel %vm1436_vm5, %v1407_v53, %v3765_v40  ;;  %v5164_v31 = vld [vmem:[#allocation18_spill] sm:$0xff]  ;;  %v5166_v53 = vld [vmem:[#allocation20_spill] sm:$0xff] }
 0x153   : > { %920 = vrot.lane.b32.xlu1 %v5161_v41, %s2846_s13  ;;  %2613 = vmatmul.mubr.msk.f32.vlgmr.msra.gmra.mxu0 %vm1639_vm11, %v1603_v36  ;;  %v1439_v51 = vsel %vm1436_vm5, %v1406_v20, %v3767_v60  ;;  %v1473_v26 = vsel %vm1469_vm6, %v1440_v9, %v897_v14 }
 0x154   : > { %1298 = vrot.lane.b32.xlu0 %v3403_v63, %s2850_s15 }
 0x155   : > { %v1087_v46 = vpop.permute.xlu1 %1086 }
 0x156   : > { %v993_v43 = vpop.permute.xlu0 %992 }
 0x157   : > { %1300 = vrot.lane.b32.xlu1 %v5162_v3, %s2850_s15  ;;  %v1506_v56 = vsel %vm1502_vm7, %v1473_v26, %v993_v43 }
 0x158   : > { %1014 = vrot.lane.b32.xlu0 %v3403_v63, %s2847_s16 }
 0x159   : > { %v1183_v55 = vpop.permute.xlu1 %1182 }
 0x15a   : > { %v1089_v21 = vpop.permute.xlu0 %1088 }
 0x15b   : > { %1110 = vrot.lane.b32.xlu1 %v3135_v19, %s2848_s8  ;;  %v1472_v19 = vsel %vm1469_vm6, %v1439_v51, %v895_v25 }
 0x15c   : > { %1016 = vrot.lane.b32.xlu0 %v5162_v3, %s2847_s16  ;;  %v1505_v4 = vsel %vm1502_vm7, %v1472_v19, %v991_v42 }
 0x15d   : > { %v1185_v61 = vpop.permute.xlu1 %1184  ;;  %v1538_v60 = vsel %vm1535_vm8, %v1505_v4, %v1087_v46 }
 0x15e   : > { %v899_v63 = vpop.permute.xlu0 %898  ;;  %v1571_v25 = vsel %vm1568_vm9, %v1538_v60, %v1183_v55  ;;  %v2737_v55 = vld [vmem:[%s2948_s9 + $0x30] sm:$0xff] }
 0x15f   : > { %1206 = vrot.lane.b32.xlu1 %v5163_v54, %s2849_s14 }
 0x160   : > { %1112 = vrot.lane.b32.xlu0 %v3129_v16, %s2848_s8  ;;  %v1539_v16 = vsel %vm1535_vm8, %v1506_v56, %v1089_v21  ;;  %v1375_v21 = vsel %vm1370_vm3, %v2737_v55, %v3504_v5  ;;  %v2739_v56 = vld [vmem:[%s2948_s9 + $0x48] sm:$0xff] }
 0x161   : > { %v901_v41 = vpop.permute.xlu1 %900  ;;  %v1572_v40 = vsel %vm1568_vm9, %v1539_v16, %v1185_v61  ;;  %v1408_v48 = vsel %vm255_vm4, %v1375_v21, %v3647_v12  ;;  %v2738_v61 = vld [vmem:[%s2948_s9 + $0x38] sm:$0xff] }
 0x162   : > { %v1279_v62 = vpop.permute.xlu0 %1278  ;;  %v1441_v20 = vsel %vm1436_vm5, %v1408_v48, %v3775_v30  ;;  %v1376_v51 = vsel %vm1370_vm3, %v2738_v61, %v3499_v52 }
 0x163   : > { %v1604_v15 = vsel %vm1601_vm10, %v1571_v25, %v1279_v62  ;;  %1208 = vrot.lane.b32.xlu1 %v5164_v31, %s2849_s14 }
 0x164   : > { %922 = vrot.lane.b32.xlu0 %v5163_v54, %s2846_s13  ;;  %2615 = vmatprep.mubr.msk.f32.mxu0 %vm1639_vm11, %v1604_v15  ;;  %v1377_v15 = vsel %vm1370_vm3, %v2739_v56, %v3512_v13  ;;  %v5167_v13 = vld [vmem:[#allocation23_spill] sm:$0xff] }
 0x165   : > { %v1281_v14 = vpop.permute.xlu1 %1280 }
 0x166   : > { %v1605_v22 = vsel %vm1601_vm10, %v1572_v40, %v1281_v14  ;;  %v995_v36 = vpop.permute.xlu0 %994  ;;  %v2740_v14 = vld [vmem:[%s2948_s9 + $0x50] sm:$0xff] }
 0x167   : > { %924 = vrot.lane.b32.xlu1 %v5164_v31, %s2846_s13  ;;  %2616 = vmatmul.mubr.msk.f32.gmra.mxu0 %vm1639_vm11, %v1605_v22  ;;  %v1410_v31 = vsel %vm255_vm4, %v1377_v15, %v3655_v33 }
 0x168   : > { %1302 = vrot.lane.b32.xlu0 %v3416_v18, %s2850_s15 }
 0x169   : > { %v1091_v42 = vpop.permute.xlu1 %1090 }
 0x16a   : > { %v997_v46 = vpop.permute.xlu0 %996 }
 0x16b   : > { %1304 = vrot.lane.b32.xlu1 %v3411_v7, %s2850_s15 }
 0x16c   : > { %1018 = vrot.lane.b32.xlu0 %v3416_v18, %s2847_s16 }
 0x16d   : > { %v1187_v43 = vpop.permute.xlu1 %1186 }
 0x16e   : > { %v1093_v3 = vpop.permute.xlu0 %1092 }
 0x16f   : > { %1114 = vrot.lane.b32.xlu1 %v3157_v37, %s2848_s8  ;;  %v1474_v37 = vsel %vm1469_vm6, %v1441_v20, %v899_v63 }
 0x170   : > { %1020 = vrot.lane.b32.xlu0 %v3411_v7, %s2847_s16  ;;  %v1409_v7 = vsel %vm255_vm4, %v1376_v51, %v3645_v2  ;;  %v1507_v5 = vsel %vm1502_vm7, %v1474_v37, %v995_v36  ;;  %v4012_v36 = vld [vmem:[%s2948_s9 + $0x110] sm:$0xff]  ;;  %v2851_v37 = vmov 0.0  }
 0x171   : > { %v1189_v10 = vpop.permute.xlu1 %1188  ;;  %v1442_v12 = vsel %vm1436_vm5, %v1409_v7, %v3773_v38  ;;  %v1540_v30 = vsel %vm1535_vm8, %v1507_v5, %v1091_v42  ;;  %256 = vst.msk [vmem:[%s4045_s23] sm:$0xff] %vm255_vm4, %v2851_v37  ;;  %257 = vst.msk [vmem:[%s4045_s23 + $0x8] sm:$0xff] %vm255_vm4, %v2851_v37  ;;  %v2742_v7 = vld [vmem:[%s2948_s9 + $0x60] sm:$0xff] }
 0x172   : > { %v903_v18 = vpop.permute.xlu0 %902  ;;  %v1475_v52 = vsel %vm1469_vm6, %v1442_v12, %v901_v41  ;;  %v1573_v63 = vsel %vm1568_vm9, %v1540_v30, %v1187_v43  ;;  %258 = vst.msk [vmem:[%s4045_s23 + $0x10] sm:$0x3] %vm253_vm12, %v2851_v37  ;;  %261 = vst.msk [vmem:[%s4045_s23 + $0x28] sm:$0x3] %vm253_vm12, %v2851_v37  ;;  %v1379_v5 = vsel %vm1370_vm3, %v2742_v7, %v3520_v45  ;;  %v4234_v45 = vld [vmem:[%s2948_s9 + $0x120] sm:$0xff] }
 0x173   : > { %1210 = vrot.lane.b32.xlu1 %v5165_v39, %s2849_s14  ;;  %v1508_v54 = vsel %vm1502_vm7, %v1475_v52, %v997_v46  ;;  %307 = vst.msk [vmem:[%s4045_s23 + $0x198] sm:$0xff] %vm255_vm4, %v2851_v37  ;;  %308 = vst.msk [vmem:[%s4045_s23 + $0x1a0] sm:$0xff] %vm255_vm4, %v2851_v37  ;;  %v1412_v12 = vsel %vm255_vm4, %v1379_v5, %v3663_v17 }
 0x174   : > { %1116 = vrot.lane.b32.xlu0 %v3151_v34, %s2848_s8  ;;  %v1541_v34 = vsel %vm1535_vm8, %v1508_v54, %v1093_v3  ;;  %309 = vst.msk [vmem:[%s4045_s23 + $0x1a8] sm:$0x3] %vm253_vm12, %v2851_v37  ;;  %264 = vst.msk [vmem:[%s4045_s23 + $0x40] sm:$0x3] %vm253_vm12, %v2851_v37 }
 0x175   : > { %v905_v47 = vpop.permute.xlu1 %904  ;;  %v1574_v38 = vsel %vm1568_vm9, %v1541_v34, %v1189_v10  ;;  %259 = vst.msk [vmem:[%s4045_s23 + $0x18] sm:$0xff] %vm255_vm4, %v2851_v37  ;;  %260 = vst.msk [vmem:[%s4045_s23 + $0x20] sm:$0xff] %vm255_vm4, %v2851_v37 }
 0x176   : > { %v1283_v19 = vpop.permute.xlu0 %1282  ;;  %262 = vst.msk [vmem:[%s4045_s23 + $0x30] sm:$0xff] %vm255_vm4, %v2851_v37  ;;  %263 = vst.msk [vmem:[%s4045_s23 + $0x38] sm:$0xff] %vm255_vm4, %v2851_v37 }
 0x177   : > { %v1606_v2 = vsel %vm1601_vm10, %v1573_v63, %v1283_v19  ;;  %1212 = vrot.lane.b32.xlu1 %v5166_v53, %s2849_s14  ;;  %265 = vst.msk [vmem:[%s4045_s23 + $0x48] sm:$0xff] %vm255_vm4, %v2851_v37  ;;  %266 = vst.msk [vmem:[%s4045_s23 + $0x50] sm:$0xff] %vm255_vm4, %v2851_v37  ;;  %v2743_v63 = vld [vmem:[%s2948_s9 + $0x68] sm:$0xff] }
 0x178   : > { %926 = vrot.lane.b32.xlu0 %v5165_v39, %s2846_s13  ;;  %2618 = vmatprep.mubr.msk.f32.mxu0 %vm1639_vm11, %v1606_v2  ;;  %267 = vst.msk [vmem:[%s4045_s23 + $0x58] sm:$0x3] %vm253_vm12, %v2851_v37  ;;  %270 = vst.msk [vmem:[%s4045_s23 + $0x70] sm:$0x3] %vm253_vm12, %v2851_v37  ;;  %v1380_v19 = vsel %vm1370_vm3, %v2743_v63, %v3518_v57  ;;  %v5176_v63 = vld [vmem:[#allocation43_spill] sm:$0xff] }
 0x179   : > { %v1285_v4 = vpop.permute.xlu1 %1284  ;;  %268 = vst.msk [vmem:[%s4045_s23 + $0x60] sm:$0xff] %vm255_vm4, %v2851_v37  ;;  %269 = vst.msk [vmem:[%s4045_s23 + $0x68] sm:$0xff] %vm255_vm4, %v2851_v37 }
 0x17a   : > { %v1607_v9 = vsel %vm1601_vm10, %v1574_v38, %v1285_v4  ;;  %v999_v60 = vpop.permute.xlu0 %998  ;;  %271 = vst.msk [vmem:[%s4045_s23 + $0x78] sm:$0xff] %vm255_vm4, %v2851_v37  ;;  %272 = vst.msk [vmem:[%s4045_s23 + $0x80] sm:$0xff] %vm255_vm4, %v2851_v37 }
 0x17b   : > { %928 = vrot.lane.b32.xlu1 %v5166_v53, %s2846_s13  ;;  %2619 = vmatmul.mubr.msk.f32.gmra.mxu0 %vm1639_vm11, %v1607_v9  ;;  %273 = vst.msk [vmem:[%s4045_s23 + $0x88] sm:$0x3] %vm253_vm12, %v2851_v37  ;;  %276 = vst.msk [vmem:[%s4045_s23 + $0xa0] sm:$0x3] %vm253_vm12, %v2851_v37  ;;  %v5169_v9 = vld [vmem:[#allocation25_spill] sm:$0xff] }
 0x17c   : > { %1306 = vrot.lane.b32.xlu0 %v3429_v35, %s2850_s15  ;;  %274 = vst.msk [vmem:[%s4045_s23 + $0x90] sm:$0xff] %vm255_vm4, %v2851_v37  ;;  %275 = vst.msk [vmem:[%s4045_s23 + $0x98] sm:$0xff] %vm255_vm4, %v2851_v37 }
 0x17d   : > { %v1095_v41 = vpop.permute.xlu1 %1094  ;;  %277 = vst.msk [vmem:[%s4045_s23 + $0xa8] sm:$0xff] %vm255_vm4, %v2851_v37  ;;  %278 = vst.msk [vmem:[%s4045_s23 + $0xb0] sm:$0xff] %vm255_vm4, %v2851_v37 }
 0x17e   : > { %v1001_v26 = vpop.permute.xlu0 %1000  ;;  %279 = vst.msk [vmem:[%s4045_s23 + $0xb8] sm:$0x3] %vm253_vm12, %v2851_v37  ;;  %282 = vst.msk [vmem:[%s4045_s23 + $0xd0] sm:$0x3] %vm253_vm12, %v2851_v37 }
 0x17f   : > { %1308 = vrot.lane.b32.xlu1 %v3424_v44, %s2850_s15  ;;  %280 = vst.msk [vmem:[%s4045_s23 + $0xc0] sm:$0xff] %vm255_vm4, %v2851_v37  ;;  %281 = vst.msk [vmem:[%s4045_s23 + $0xc8] sm:$0xff] %vm255_vm4, %v2851_v37 }
 0x180   : > { %1022 = vrot.lane.b32.xlu0 %v3429_v35, %s2847_s16  ;;  %v1443_v35 = vsel %vm1436_vm5, %v1410_v31, %v3783_v24  ;;  %283 = vst.msk [vmem:[%s4045_s23 + $0xd8] sm:$0xff] %vm255_vm4, %v2851_v37  ;;  %284 = vst.msk [vmem:[%s4045_s23 + $0xe0] sm:$0xff] %vm255_vm4, %v2851_v37  ;;  %v5170_v31 = vld [vmem:[#allocation24_spill] sm:$0xff] }
 0x181   : > { %v1191_v25 = vpop.permute.xlu1 %1190  ;;  %v1476_v22 = vsel %vm1469_vm6, %v1443_v35, %v903_v18  ;;  %v5168_v18 = vld [vmem:[#allocation22_spill] sm:$0xff]  ;;  %285 = vst.msk [vmem:[%s4045_s23 + $0xe8] sm:$0x3] %vm253_vm12, %v2851_v37  ;;  %288 = vst.msk [vmem:[%s4045_s23 + $0x100] sm:$0x3] %vm253_vm12, %v2851_v37 }
 0x182   : > { %v1097_v62 = vpop.permute.xlu0 %1096  ;;  %v1509_v33 = vsel %vm1502_vm7, %v1476_v22, %v999_v60  ;;  %286 = vst.msk [vmem:[%s4045_s23 + $0xf0] sm:$0xff] %vm255_vm4, %v2851_v37  ;;  %287 = vst.msk [vmem:[%s4045_s23 + $0xf8] sm:$0xff] %vm255_vm4, %v2851_v37  ;;  %v4258_v60 = vld [vmem:[%s2948_s9 + $0x128] sm:$0xff] }
 0x183   : > { %1118 = vrot.lane.b32.xlu1 %v3179_v59, %s2848_s8  ;;  %v1378_v59 = vsel %vm1370_vm3, %v2740_v14, %v3510_v8  ;;  %v1542_v8 = vsel %vm1535_vm8, %v1509_v33, %v1095_v41  ;;  %289 = vst.msk [vmem:[%s4045_s23 + $0x108] sm:$0xff] %vm255_vm4, %v2851_v37  ;;  %290 = vst.msk [vmem:[%s4045_s23 + $0x110] sm:$0xff] %vm255_vm4, %v2851_v37  ;;  %v2747_v33 = vld [vmem:[%s2948_s9 + $0x80] sm:$0xff] }
 0x184   : > { %1024 = vrot.lane.b32.xlu0 %v3424_v44, %s2847_s16  ;;  %v1411_v44 = vsel %vm255_vm4, %v1378_v59, %v3653_v11  ;;  %v1575_v43 = vsel %vm1568_vm9, %v1542_v8, %v1191_v25  ;;  %291 = vst.msk [vmem:[%s4045_s23 + $0x118] sm:$0x3] %vm253_vm12, %v2851_v37  ;;  %294 = vst.msk [vmem:[%s4045_s23 + $0x130] sm:$0x3] %vm253_vm12, %v2851_v37  ;;  %v5172_v8 = vld [vmem:[#allocation62_spill] sm:$0xff] }
 0x185   : > { %v1193_v16 = vpop.permute.xlu1 %1192  ;;  %v1444_v24 = vsel %vm1436_vm5, %v1411_v44, %v3781_v23  ;;  %292 = vst.msk [vmem:[%s4045_s23 + $0x120] sm:$0xff] %vm255_vm4, %v2851_v37  ;;  %293 = vst.msk [vmem:[%s4045_s23 + $0x128] sm:$0xff] %vm255_vm4, %v2851_v37 }
 0x186   : > { %v4000_v40 = vpop.permute.xlu0 %906  ;;  %v1477_v46 = vsel %vm1469_vm6, %v1444_v24, %v905_v47  ;;  %295 = vst.msk [vmem:[%s4045_s23 + $0x138] sm:$0xff] %vm255_vm4, %v2851_v37  ;;  %296 = vst.msk [vmem:[%s4045_s23 + $0x140] sm:$0xff] %vm255_vm4, %v2851_v37  ;;  %v1445_v47 = vsel %vm1436_vm5, %v1412_v12, %v3791_v6 }
 0x187   : > { %1214 = vrot.lane.b32.xlu1 %v5167_v13, %s2849_s14  ;;  %v1510_v3 = vsel %vm1502_vm7, %v1477_v46, %v1001_v26  ;;  %297 = vst.msk [vmem:[%s4045_s23 + $0x148] sm:$0x3] %vm253_vm12, %v2851_v37  ;;  %300 = vst.msk [vmem:[%s4045_s23 + $0x160] sm:$0x3] %vm253_vm12, %v2851_v37  ;;  %v1478_v54 = vsel %vm1469_vm6, %v1445_v47, %v4000_v40  ;;  %v2746_v40 = vld [vmem:[%s2948_s9 + $0x78] sm:$0xff]  ;;  %v5175_v47 = vld [vmem:[#allocation37_spill] sm:$0xff] }
 0x188   : > { %1120 = vrot.lane.b32.xlu0 %v4012_v36, %s2848_s8  ;;  %v1543_v21 = vsel %vm1535_vm8, %v1510_v3, %v1097_v62  ;;  %298 = vst.msk [vmem:[%s4045_s23 + $0x150] sm:$0xff] %vm255_vm4, %v2851_v37  ;;  %299 = vst.msk [vmem:[%s4045_s23 + $0x158] sm:$0xff] %vm255_vm4, %v2851_v37  ;;  %v1381_v14 = vsel %vm1370_vm3, %v2746_v40, %v3528_v27  ;;  %v5171_v27 = vld [vmem:[#allocation35_spill] sm:$0xff] }
 0x189   : > { %v4019_v42 = vpop.permute.xlu1 %908  ;;  %v1576_v23 = vsel %vm1568_vm9, %v1543_v21, %v1193_v16  ;;  %301 = vst.msk [vmem:[%s4045_s23 + $0x168] sm:$0xff] %vm255_vm4, %v2851_v37  ;;  %302 = vst.msk [vmem:[%s4045_s23 + $0x170] sm:$0xff] %vm255_vm4, %v2851_v37  ;;  %v1414_v59 = vsel %vm255_vm4, %v1381_v14, %v3671_v0  ;;  %v5183_v14 = vld [vmem:[#allocation36_spill] sm:$0xff] }
 0x18a   : > { %v1287_v11 = vpop.permute.xlu0 %1286  ;;  %303 = vst.msk [vmem:[%s4045_s23 + $0x178] sm:$0x3] %vm253_vm12, %v2851_v37  ;;  %306 = vst.msk [vmem:[%s4045_s23 + $0x190] sm:$0x3] %vm253_vm12, %v2851_v37 }
 0x18b   : > { %v1608_v55 = vsel %vm1601_vm10, %v1575_v43, %v1287_v11  ;;  %930 = vrot.lane.b32.xlu1 %v5167_v13, %s2846_s13  ;;  %304 = vst.msk [vmem:[%s4045_s23 + $0x180] sm:$0xff] %vm255_vm4, %v2851_v37  ;;  %305 = vst.msk [vmem:[%s4045_s23 + $0x188] sm:$0xff] %vm255_vm4, %v2851_v37  ;;  %v1447_v13 = vsel %vm1436_vm5, %v1414_v59, %v3799_v1  ;;  %v5173_v1 = vld [vmem:[#allocation11_spill] sm:$0xff] }
 0x18c   : > { %836 = vrot.lane.b32.xlu0 %v4012_v36, %s2845_s12  ;;  %2621 = vmatprep.mubr.msk.f32.mxu0 %vm1639_vm11, %v1608_v55 }
 0x18d   : > { %v1289_v48 = vpop.permute.xlu1 %1288 }
 0x18e   : > { %v1609_v10 = vsel %vm1601_vm10, %v1576_v23, %v1289_v48  ;;  %v4033_v20 = vpop.permute.xlu0 %1002  ;;  %v4304_v48 = vld [vmem:[%s2948_s9 + $0x138] sm:$0xff] }
 0x18f   : > { %1310 = vrot.lane.b32.xlu1 %v3442_v58, %s2850_s15  ;;  %2622 = vmatmul.mubr.msk.f32.gmra.mxu0 %vm1639_vm11, %v1609_v10  ;;  %v1511_v17 = vsel %vm1502_vm7, %v1478_v54, %v4033_v20  ;;  %v5177_v54 = vld [vmem:[#allocation26_spill] sm:$0xff] }
 0x190   : > { %1216 = vrot.lane.b32.xlu0 %v5168_v18, %s2849_s14 }
 0x191   : > { %v4047_v61 = vpop.permute.xlu1 %1098 }
 0x192   : > { %v4049_v51 = vpop.permute.xlu0 %1004  ;;  %v1544_v6 = vsel %vm1535_vm8, %v1511_v17, %v4047_v61 }
 0x193   : > { %1026 = vrot.lane.b32.xlu1 %v3442_v58, %s2847_s16 }
 0x194   : > { %932 = vrot.lane.b32.xlu0 %v5168_v18, %s2846_s13 }
 0x195   : > { %v1195_v58 = vpop.permute.xlu1 %1194 }
 0x196   : > { %v1101_v39 = vpop.permute.xlu0 %1100  ;;  %v1577_v34 = vsel %vm1568_vm9, %v1544_v6, %v1195_v58  ;;  %v5174_v58 = vld [vmem:[#allocation27_spill] sm:$0xff]  ;;  %v5179_v6 = vld [vmem:[#allocation13_spill] sm:$0xff] }
 0x197   : > { %1028 = vrot.lane.b32.xlu1 %v3437_v49, %s2847_s16 }
 0x198   : > { %1312 = vrot.lane.b32.xlu0 %v3437_v49, %s2850_s15  ;;  %v1413_v49 = vsel %vm255_vm4, %v1380_v19, %v3661_v28 }
 0x199   : > { %v1197_v30 = vpop.permute.xlu1 %1196  ;;  %v1446_v57 = vsel %vm1436_vm5, %v1413_v49, %v3789_v32  ;;  %v5178_v49 = vld [vmem:[#allocation64_spill] sm:$0xff] }
 0x19a   : > { %v911_v52 = vpop.permute.xlu0 %910  ;;  %v1479_v53 = vsel %vm1469_vm6, %v1446_v57, %v4019_v42 }
 0x19b   : > { %838 = vrot.lane.b32.xlu1 %v4234_v45, %s2845_s12  ;;  %v1512_v28 = vsel %vm1502_vm7, %v1479_v53, %v4049_v51  ;;  %v1480_v24 = vsel %vm1469_vm6, %v1447_v13, %v911_v52  ;;  %v2750_v52 = vld [vmem:[%s2948_s9 + $0x90] sm:$0xff] }
 0x19c   : > { %1122 = vrot.lane.b32.xlu0 %v4234_v45, %s2848_s8  ;;  %v1545_v32 = vsel %vm1535_vm8, %v1512_v28, %v1101_v39  ;;  %v4318_v39 = vld [vmem:[%s2948_s9 + $0x140] sm:$0xff]  ;;  %v1383_v19 = vsel %vm1370_vm3, %v2750_v52, %v5176_v63 }
 0x19d   : > { %v913_v2 = vpop.permute.xlu1 %912  ;;  %v1578_v41 = vsel %vm1568_vm9, %v1545_v32, %v1197_v30  ;;  %v1416_v17 = vsel %vm255_vm4, %v1383_v19, %v5178_v49 }
 0x19e   : > { %v1291_v38 = vpop.permute.xlu0 %1290 }
 0x19f   : > { %v1610_v4 = vsel %vm1601_vm10, %v1577_v34, %v1291_v38  ;;  %1218 = vrot.lane.b32.xlu1 %v5169_v9, %s2849_s14  ;;  %v2751_v34 = vld [vmem:[%s2948_s9 + $0x98] sm:$0xff]  ;;  %v5180_v38 = vld [vmem:[#allocation42_spill] sm:$0xff] }
 0x1a0   : > { %1124 = vrot.lane.b32.xlu0 %v4258_v60, %s2848_s8  ;;  %2624 = vmatprep.mubr.msk.f32.mxu0 %vm1639_vm11, %v1610_v4  ;;  %v1384_v28 = vsel %vm1370_vm3, %v2751_v34, %v5180_v38 }
 0x1a1   : > { %v1293_v26 = vpop.permute.xlu1 %1292 }
 0x1a2   : > { %v1611_v25 = vsel %vm1601_vm10, %v1578_v41, %v1293_v26  ;;  %v1007_v62 = vpop.permute.xlu0 %1006  ;;  %v5182_v26 = vld [vmem:[#allocation10_spill] sm:$0xff] }
 0x1a3   : > { %934 = vrot.lane.b32.xlu1 %v5169_v9, %s2846_s13  ;;  %2625 = vmatmul.mubr.msk.f32.gmra.mxu0 %vm1639_vm11, %v1611_v25  ;;  %v1513_v0 = vsel %vm1502_vm7, %v1480_v24, %v1007_v62  ;;  %v5181_v9 = vld [vmem:[#allocation63_spill] sm:$0xff] }
 0x1a4   : > { %840 = vrot.lane.b32.xlu0 %v4258_v60, %s2845_s12  ;;  %v1417_v32 = vsel %vm255_vm4, %v1384_v28, %v5181_v9 }
 0x1a5   : > { %v1103_v56 = vpop.permute.xlu1 %1102  ;;  %v1450_v25 = vsel %vm1436_vm5, %v1417_v32, %v5182_v26 }
 0x1a6   : > { %v1009_v15 = vpop.permute.xlu0 %1008  ;;  %v1546_v43 = vsel %vm1535_vm8, %v1513_v0, %v1103_v56 }
 0x1a7   : > { %1314 = vrot.lane.b32.xlu1 %v3455_v29, %s2850_s15 }
 0x1a8   : > { %1220 = vrot.lane.b32.xlu0 %v5170_v31, %s2849_s14 }
 0x1a9   : > { %v1199_v16 = vpop.permute.xlu1 %1198 }
 0x1aa   : > { %v1105_v35 = vpop.permute.xlu0 %1104  ;;  %v1579_v3 = vsel %vm1568_vm9, %v1546_v43, %v1199_v16  ;;  %v5185_v43 = vld [vmem:[#allocation45_spill] sm:$0xff] }
 0x1ab   : > { %1030 = vrot.lane.b32.xlu1 %v3455_v29, %s2847_s16  ;;  %v1382_v29 = vsel %vm1370_vm3, %v2747_v33, %v3526_v50 }
 0x1ac   : > { %936 = vrot.lane.b32.xlu0 %v5170_v31, %s2846_s13  ;;  %v1415_v42 = vsel %vm255_vm4, %v1382_v29, %v5172_v8  ;;  %v4364_v29 = vld [vmem:[%s2948_s9 + $0x150] sm:$0xff]  ;;  %v5184_v8 = vld [vmem:[#allocation29_spill] sm:$0xff] }
 0x1ad   : > { %v1201_v22 = vpop.permute.xlu1 %1200  ;;  %v1448_v46 = vsel %vm1436_vm5, %v1415_v42, %v5173_v1  ;;  %v4374_v42 = vld [vmem:[%s2948_s9 + $0x158] sm:$0xff] }
 0x1ae   : > { %v915_v44 = vpop.permute.xlu0 %914  ;;  %v1481_v50 = vsel %vm1469_vm6, %v1448_v46, %v913_v2  ;;  %v1449_v2 = vsel %vm1436_vm5, %v1416_v17, %v5179_v6  ;;  %v2754_v46 = vld [vmem:[%s2948_s9 + $0xa8] sm:$0xff] }
 0x1af   : > { %1032 = vrot.lane.b32.xlu1 %v5171_v27, %s2847_s16  ;;  %v1514_v21 = vsel %vm1502_vm7, %v1481_v50, %v1009_v15  ;;  %v1482_v4 = vsel %vm1469_vm6, %v1449_v2, %v915_v44  ;;  %v5186_v50 = vld [vmem:[#allocation65_spill] sm:$0xff] }
 0x1b0   : > { %1316 = vrot.lane.b32.xlu0 %v5171_v27, %s2850_s15  ;;  %v1547_v10 = vsel %vm1535_vm8, %v1514_v21, %v1105_v35  ;;  %v5187_v21 = vld [vmem:[#allocation80_spill] sm:$0xff] }
 0x1b1   : > { %v917_v11 = vpop.permute.xlu1 %916  ;;  %v1580_v20 = vsel %vm1568_vm9, %v1547_v10, %v1201_v22 }
 0x1b2   : > { %v1295_v55 = vpop.permute.xlu0 %1294  ;;  %v1483_v15 = vsel %vm1469_vm6, %v1450_v25, %v917_v11  ;;  %v1385_v11 = vsel %vm1370_vm3, %v2754_v46, %v5185_v43  ;;  %v5200_v46 = vld [vmem:[#allocation32_spill] sm:$0xff] }
 0x1b3   : > { %v1612_v23 = vsel %vm1601_vm10, %v1579_v3, %v1295_v55  ;;  %842 = vrot.lane.b32.xlu1 %v4304_v48, %s2845_s12  ;;  %v1418_v3 = vsel %vm255_vm4, %v1385_v11, %v5186_v50 }
 0x1b4   : > { %1126 = vrot.lane.b32.xlu0 %v4304_v48, %s2848_s8  ;;  %2627 = vmatprep.mubr.msk.f32.mxu0 %vm1639_vm11, %v1612_v23  ;;  %v1451_v23 = vsel %vm1436_vm5, %v1418_v3, %v5187_v21 }
 0x1b5   : > { %v1297_v18 = vpop.permute.xlu1 %1296 }
 0x1b6   : > { %v1613_v61 = vsel %vm1601_vm10, %v1580_v20, %v1297_v18  ;;  %v1011_v51 = vpop.permute.xlu0 %1010  ;;  %v2755_v20 = vld [vmem:[%s2948_s9 + $0xb0] sm:$0xff]  ;;  %v5188_v18 = vld [vmem:[#allocation44_spill] sm:$0xff] }
 0x1b7   : > { %1222 = vrot.lane.b32.xlu1 %v5174_v58, %s2849_s14  ;;  %2628 = vmatmul.mubr.msk.f32.gmra.mxu0 %vm1639_vm11, %v1613_v61  ;;  %v1515_v41 = vsel %vm1502_vm7, %v1482_v4, %v1011_v51  ;;  %v1386_v61 = vsel %vm1370_vm3, %v2755_v20, %v5188_v18  ;;  %v5193_v4 = vld [vmem:[#allocation38_spill] sm:$0xff] }
 0x1b8   : > { %1128 = vrot.lane.b32.xlu0 %v4318_v39, %s2848_s8 }
 0x1b9   : > { %v1107_v7 = vpop.permute.xlu1 %1106 }
 0x1ba   : > { %v1013_v5 = vpop.permute.xlu0 %1012  ;;  %v1548_v62 = vsel %vm1535_vm8, %v1515_v41, %v1107_v7  ;;  %v5190_v7 = vld [vmem:[#allocation7_spill] sm:$0xff]  ;;  %v4421_v41 = vld [vmem:[%s2948_s9 + $0x168] sm:$0xff] }
 0x1bb   : > { %938 = vrot.lane.b32.xlu1 %v5174_v58, %s2846_s13  ;;  %v1516_v35 = vsel %vm1502_vm7, %v1483_v15, %v1013_v5  ;;  %v5189_v58 = vld [vmem:[#allocation39_spill] sm:$0xff]  ;;  %v1419_v5 = vsel %vm255_vm4, %v1386_v61, %v5190_v7  ;;  %v5202_v61 = vld [vmem:[#allocation30_spill] sm:$0xff] }
 0x1bc   : > { %844 = vrot.lane.b32.xlu0 %v4318_v39, %s2845_s12  ;;  %v5195_v15 = vld [vmem:[#allocation47_spill] sm:$0xff] }
 0x1bd   : > { %v1203_v12 = vpop.permute.xlu1 %1202 }
 0x1be   : > { %v1109_v30 = vpop.permute.xlu0 %1108  ;;  %v1581_v31 = vsel %vm1568_vm9, %v1548_v62, %v1203_v12  ;;  %v5194_v62 = vld [vmem:[#allocation31_spill] sm:$0xff] }
 0x1bf   : > { %1318 = vrot.lane.b32.xlu1 %v5175_v47, %s2850_s15  ;;  %v1549_v59 = vsel %vm1535_vm8, %v1516_v35, %v1109_v30  ;;  %v5191_v30 = vld [vmem:[#allocation28_spill] sm:$0xff]  ;;  %v5196_v35 = vld [vmem:[#allocation67_spill] sm:$0xff] }
 0x1c0   : > { %1224 = vrot.lane.b32.xlu0 %v5177_v54, %s2849_s14 }
 0x1c1   : > { %v1205_v57 = vpop.permute.xlu1 %1204 }
 0x1c2   : > { %v919_v53 = vpop.permute.xlu0 %918  ;;  %v1582_v22 = vsel %vm1568_vm9, %v1549_v59, %v1205_v57  ;;  %v5197_v59 = vld [vmem:[#allocation81_spill] sm:$0xff] }
 0x1c3   : > { %1034 = vrot.lane.b32.xlu1 %v5175_v47, %s2847_s16  ;;  %v1484_v51 = vsel %vm1469_vm6, %v1451_v23, %v919_v53  ;;  %v5192_v47 = vld [vmem:[#allocation12_spill] sm:$0xff] }
 0x1c4   : > { %940 = vrot.lane.b32.xlu0 %v5177_v54, %s2846_s13  ;;  %v1452_v52 = vsel %vm1436_vm5, %v1419_v5, %v5192_v47  ;;  %v361_v47 = vld [vmem:[%s2948_s9 + $0x188] sm:$0xff] }
 0x1c5   : > { %v921_v56 = vpop.permute.xlu1 %920 }
 0x1c6   : > { %v1299_v16 = vpop.permute.xlu0 %1298  ;;  %v1485_v54 = vsel %vm1469_vm6, %v1452_v52, %v921_v56  ;;  %v2757_v56 = vld [vmem:[%s2948_s9 + $0xc0] sm:$0xff] }
 0x1c7   : > { %v1614_v40 = vsel %vm1601_vm10, %v1581_v31, %v1299_v16  ;;  %1036 = vrot.lane.b32.xlu1 %v5183_v14, %s2847_s16  ;;  %v1387_v31 = vsel %vm1370_vm3, %v2757_v56, %v5195_v15  ;;  %v4433_v16 = vld [vmem:[%s2948_s9 + $0x170] sm:$0xff] }
 0x1c8   : > { %1320 = vrot.lane.b32.xlu0 %v5183_v14, %s2850_s15  ;;  %2630 = vmatprep.mubr.msk.f32.mxu0 %vm1639_vm11, %v1614_v40  ;;  %v1420_v40 = vsel %vm255_vm4, %v1387_v31, %v5196_v35  ;;  %v585_v31 = vrot.slane %v361_v47, 2 }
 0x1c9   : > { %v1301_v13 = vpop.permute.xlu1 %1300 }
 0x1ca   : > { %v1615_v44 = vsel %vm1601_vm10, %v1582_v22, %v1301_v13  ;;  %v1015_v33 = vpop.permute.xlu0 %1014  ;;  %v1453_v22 = vsel %vm1436_vm5, %v1420_v40, %v5197_v59 }
 0x1cb   : > { %846 = vrot.lane.b32.xlu1 %v4364_v29, %s2845_s12  ;;  %2631 = vmatmul.mubr.msk.f32.gmra.mxu0 %vm1639_vm11, %v1615_v44  ;;  %v1517_v12 = vsel %vm1502_vm7, %v1484_v51, %v1015_v33  ;;  %v2759_v44 = vld [vmem:[%s2948_s9 + $0xc8] sm:$0xff] }
 0x1cc   : > { %1130 = vrot.lane.b32.xlu0 %v4364_v29, %s2848_s8  ;;  %v5198_v33 = vld [vmem:[#allocation46_spill] sm:$0xff] }
 0x1cd   : > { %v1111_v24 = vpop.permute.xlu1 %1110 }
 0x1ce   : > { %v1017_v27 = vpop.permute.xlu0 %1016  ;;  %v1550_v63 = vsel %vm1535_vm8, %v1517_v12, %v1111_v24  ;;  %v1388_v24 = vsel %vm1370_vm3, %v2759_v44, %v5198_v33  ;;  %v5207_v44 = vld [vmem:[#allocation48_spill] sm:$0xff] }
 0x1cf   : > { %1226 = vrot.lane.b32.xlu1 %v5184_v8, %s2849_s14  ;;  %v1518_v57 = vsel %vm1502_vm7, %v1485_v54, %v1017_v27  ;;  %v580_v54 = vrot.slane %v361_v47, 1 }
 0x1d0   : > { %1132 = vrot.lane.b32.xlu0 %v4374_v42, %s2848_s8 }
 0x1d1   : > { %v1207_v0 = vpop.permute.xlu1 %1206 }
 0x1d2   : > { %v1113_v1 = vpop.permute.xlu0 %1112  ;;  %v1583_v49 = vsel %vm1568_vm9, %v1550_v63, %v1207_v0  ;;  %v5203_v63 = vld [vmem:[#allocation40_spill] sm:$0xff] }
 0x1d3   : > { %942 = vrot.lane.b32.xlu1 %v5184_v8, %s2846_s13  ;;  %v1551_v2 = vsel %vm1535_vm8, %v1518_v57, %v1113_v1  ;;  %v5199_v8 = vld [vmem:[#allocation66_spill] sm:$0xff]  ;;  %v2760_v57 = vld [vmem:[%s2948_s9 + $0xd8] sm:$0xff] }
 0x1d4   : > { %848 = vrot.lane.b32.xlu0 %v4374_v42, %s2845_s12  ;;  %v1421_v0 = vsel %vm255_vm4, %v1388_v24, %v5199_v8 }
 0x1d5   : > { %v1209_v55 = vpop.permute.xlu1 %1208  ;;  %v1454_v43 = vsel %vm1436_vm5, %v1421_v0, %v5200_v46  ;;  %v5209_v46 = vld [vmem:[#allocation82_spill] sm:$0xff] }
 0x1d6   : > { %v923_v10 = vpop.permute.xlu0 %922  ;;  %v1584_v53 = vsel %vm1568_vm9, %v1551_v2, %v1209_v55 }
 0x1d7   : > { %1322 = vrot.lane.b32.xlu1 %v5189_v58, %s2850_s15  ;;  %v1486_v27 = vsel %vm1469_vm6, %v1453_v22, %v923_v10  ;;  %v5201_v10 = vld [vmem:[#allocation41_spill] sm:$0xff] }
 0x1d8   : > { %1228 = vrot.lane.b32.xlu0 %v5191_v30, %s2849_s14 }
 0x1d9   : > { %v925_v19 = vpop.permute.xlu1 %924 }
 0x1da   : > { %v1303_v17 = vpop.permute.xlu0 %1302  ;;  %v1487_v3 = vsel %vm1469_vm6, %v1454_v43, %v925_v19 }
 0x1db   : > { %v1616_v6 = vsel %vm1601_vm10, %v1583_v49, %v1303_v17  ;;  %1038 = vrot.lane.b32.xlu1 %v5189_v58, %s2847_s16 }
 0x1dc   : > { %944 = vrot.lane.b32.xlu0 %v5191_v30, %s2846_s13  ;;  %2633 = vmatprep.mubr.msk.f32.mxu0 %vm1639_vm11, %v1616_v6  ;;  %v360_v30 = vld [vmem:[%s2948_s9 + $0x180] sm:$0xff] }
 0x1dd   : > { %v1305_v34 = vpop.permute.xlu1 %1304  ;;  %v579_v19 = vrot.slane %v360_v30, 1  ;;  %v5204_v6 = vld [vmem:[#allocation49_spill] sm:$0xff]  ;;  %v584_v15 = vrot.slane %v360_v30, 2 }
 0x1de   : > { %v1617_v38 = vsel %vm1601_vm10, %v1584_v53, %v1305_v34  ;;  %v1019_v28 = vpop.permute.xlu0 %1018  ;;  %v1389_v2 = vsel %vm1370_vm3, %v2760_v57, %v5204_v6  ;;  %v5205_v53 = vld [vmem:[#allocation69_spill] sm:$0xff] }
 0x1df   : > { %1040 = vrot.lane.b32.xlu1 %v5193_v4, %s2847_s16  ;;  %2634 = vmatmul.mubr.msk.f32.gmra.mxu0 %vm1639_vm11, %v1617_v38  ;;  %v1519_v1 = vsel %vm1502_vm7, %v1486_v27, %v1019_v28  ;;  %v1422_v34 = vsel %vm255_vm4, %v1389_v2, %v5205_v53  ;;  %v581_v38 = vsel %vm414_vm0, %v579_v19, %v580_v54  ;;  %v5206_v28 = vld [vmem:[#allocation83_spill] sm:$0xff]  ;;  %v5208_v27 = vld [vmem:[#allocation68_spill] sm:$0xff] }
 0x1e0   : > { %1324 = vrot.lane.b32.xlu0 %v5193_v4, %s2850_s15  ;;  %v1455_v4 = vsel %vm1436_vm5, %v1422_v34, %v5206_v28  ;;  %v586_v24 = vsel %vm495_vm1, %v584_v15, %v585_v31  ;;  %v5212_v2 = vld [vmem:[#allocation15_spill] sm:$0xff] }
 0x1e1   : > { %v1115_v9 = vpop.permute.xlu1 %1114 }
 0x1e2   : > { %v1021_v32 = vpop.permute.xlu0 %1020  ;;  %v1552_v11 = vsel %vm1535_vm8, %v1519_v1, %v1115_v9 }
 0x1e3   : > { %850 = vrot.lane.b32.xlu1 %v4421_v41, %s2845_s12  ;;  %v1520_v23 = vsel %vm1502_vm7, %v1487_v3, %v1021_v32 }
 0x1e4   : > { %1134 = vrot.lane.b32.xlu0 %v4421_v41, %s2848_s8 }
 0x1e5   : > { %v1211_v26 = vpop.permute.xlu1 %1210 }
 0x1e6   : > { %v1117_v25 = vpop.permute.xlu0 %1116  ;;  %v1585_v55 = vsel %vm1568_vm9, %v1552_v11, %v1211_v26 }
 0x1e7   : > { %1230 = vrot.lane.b32.xlu1 %v5194_v62, %s2849_s14  ;;  %v1553_v18 = vsel %vm1535_vm8, %v1520_v23, %v1117_v25  ;;  %v362_v25 = vld [vmem:[%s2948_s9 + $0x190] sm:$0x3] }
 0x1e8   : > { %1136 = vrot.lane.b32.xlu0 %v4433_v16, %s2848_s8 }
 0x1e9   : > { %v1213_v14 = vpop.permute.xlu1 %1212 }
 0x1ea   : > { %v927_v13 = vpop.permute.xlu0 %926  ;;  %v1586_v51 = vsel %vm1568_vm9, %v1553_v18, %v1213_v14  ;;  %v582_v14 = vrot.slane %v362_v25, 1 }
 0x1eb   : > { %946 = vrot.lane.b32.xlu1 %v5194_v62, %s2846_s13  ;;  %v1488_v32 = vsel %vm1469_vm6, %v1455_v4, %v927_v13  ;;  %v2761_v13 = vld [vmem:[%s2948_s9 + $0xe0] sm:$0xff] }
 0x1ec   : > { %852 = vrot.lane.b32.xlu0 %v4433_v16, %s2845_s12  ;;  %v1390_v33 = vsel %vm1370_vm3, %v2761_v13, %v5207_v44  ;;  %v583_v1 = vsel %vm414_vm0, %v580_v54, %v582_v14 }
 0x1ed   : > { %v929_v50 = vpop.permute.xlu1 %928  ;;  %v1423_v8 = vsel %vm255_vm4, %v1390_v33, %v5208_v27 }
 0x1ee   : > { %v1307_v21 = vpop.permute.xlu0 %1306  ;;  %v1456_v43 = vsel %vm1436_vm5, %v1423_v8, %v5209_v46 }
 0x1ef   : > { %1326 = vrot.lane.b32.xlu1 %v5201_v10, %s2850_s15  ;;  %v1618_v20 = vsel %vm1601_vm10, %v1585_v55, %v1307_v21  ;;  %v1489_v3 = vsel %vm1469_vm6, %v1456_v43, %v929_v50  ;;  %v587_v21 = vrot.slane %v362_v25, 2 }
 0x1f0   : > { %1232 = vrot.lane.b32.xlu0 %v5202_v61, %s2849_s14  ;;  %2636 = vmatprep.mubr.msk.f32.mxu1 %vm1639_vm11, %v1618_v20 }
 0x1f1   : > { %v1309_v58 = vpop.permute.xlu1 %1308  ;;  %v588_v50 = vsel %vm495_vm1, %v585_v31, %v587_v21 }
 0x1f2   : > { %v1619_v7 = vsel %vm1601_vm10, %v1586_v51, %v1309_v58  ;;  %v1023_v5 = vpop.permute.xlu0 %1022  ;;  %v364_v58 = vld [vmem:[%s2948_s9 + $0x1a0] sm:$0xff] }
 0x1f3   : > { %1042 = vrot.lane.b32.xlu1 %v5201_v10, %s2847_s16  ;;  %2637 = vmatmul.mubr.msk.f32.vlgmr.msra.gmra.mxu1 %vm1639_vm11, %v1619_v7  ;;  %v1521_v62 = vsel %vm1502_vm7, %v1488_v32, %v1023_v5  ;;  %v365_v7 = vld [vmem:[%s2948_s9 + $0x1a8] sm:$0x3]  ;;  %v598_v34 = vrot.slane %v364_v58, 2 }
 0x1f4   : > { %948 = vrot.lane.b32.xlu0 %v5202_v61, %s2846_s13  ;;  %v600_v25 = vrot.slane %v365_v7, 2 }
 0x1f5   : > { %v1119_v12 = vpop.permute.xlu1 %1118 }
 0x1f6   : > { %v1025_v52 = vpop.permute.xlu0 %1024  ;;  %v1554_v56 = vsel %vm1535_vm8, %v1521_v62, %v1119_v12  ;;  %v363_v12 = vld [vmem:[%s2948_s9 + $0x198] sm:$0xff]  ;;  %v601_v8 = vsel %vm495_vm1, %v598_v34, %v600_v25 }
 0x1f7   : > { %1044 = vrot.lane.b32.xlu1 %v5203_v63, %s2847_s16  ;;  %v1522_v55 = vsel %vm1502_vm7, %v1489_v3, %v1025_v52  ;;  %v2762_v52 = vld [vmem:[%s2948_s9 + $0xf0] sm:$0xff]  ;;  %v597_v4 = vrot.slane %v363_v12, 2 }
 0x1f8   : > { %1328 = vrot.lane.b32.xlu0 %v5203_v63, %s2850_s15  ;;  %v5210_v63 = vld [vmem:[#allocation51_spill] sm:$0xff] }
 0x1f9   : > { %v1215_v49 = vpop.permute.xlu1 %1214  ;;  %v1391_v19 = vsel %vm1370_vm3, %v2762_v52, %v5210_v63 }
 0x1fa   : > { %v1121_v17 = vpop.permute.xlu0 %1120  ;;  %v1587_v35 = vsel %vm1568_vm9, %v1554_v56, %v1215_v49  ;;  %v592_v49 = vrot.slane %v363_v12, 1 }
 0x1fb   : > { %854 = vrot.lane.b32.xlu1 %v360_v30, %s2845_s12  ;;  %v1555_v23 = vsel %vm1535_vm8, %v1522_v55, %v1121_v17  ;;  %v5211_v17 = vld [vmem:[#allocation71_spill] sm:$0xff] }
 0x1fc   : > { %1138 = vrot.lane.b32.xlu0 %v360_v30, %s2848_s8  ;;  %v593_v30 = vrot.slane %v364_v58, 1  ;;  %v1424_v57 = vsel %vm255_vm4, %v1391_v19, %v5211_v17 }
 0x1fd   : > { %v4488_v9 = vpop.permute.xlu1 %930  ;;  %v1457_v53 = vsel %vm1436_vm5, %v1424_v57, %v5212_v2 }
 0x1fe   : > { %v4491_v26 = vpop.permute.xlu0 %836  ;;  %v1490_v62 = vsel %vm1469_vm6, %v1457_v53, %v4488_v9 }
 0x1ff   : > { %1234 = vrot.lane.b32.xlu1 %v581_v38, %s2849_s14 }
 0x200   : > { %1140 = vrot.lane.b32.xlu0 %v361_v47, %s2848_s8 }
 0x201   : > { %v1311_v40 = vpop.permute.xlu1 %1310 }
 0x202   : > { %v1620_v59 = vsel %vm1601_vm10, %v1587_v35, %v1311_v40  ;;  %v1217_v22 = vpop.permute.xlu0 %1216  ;;  %v594_v35 = vsel %vm414_vm0, %v592_v49, %v593_v30 }
 0x203   : > { %950 = vrot.lane.b32.xlu1 %v581_v38, %s2846_s13  ;;  %2639 = vmatprep.mubr.msk.f32.mxu1 %vm1639_vm11, %v1620_v59  ;;  %v1588_v20 = vsel %vm1568_vm9, %v1555_v23, %v1217_v22 }
 0x204   : > { %856 = vrot.lane.b32.xlu0 %v361_v47, %s2845_s12  ;;  %v595_v47 = vrot.slane %v365_v7, 1  ;;  %s2562_s12 = sshll.u32 %s2833_s21, 5  ;;  %s2769_s21 = sshll.u32 %s2852_s10, 4  ;;  %s2770_s21 = int_to_ptr.vmem [resolvable:$false] %s2769_s21 }
 0x205   : > { %v1027_v0 = vpop.permute.xlu1 %1026  ;;  %s2372_s27 = scalar_lea.hbm %s4984_s5, %s2562_s12  ;;  %s2771_s11 = scalar_lea.vmem %s2770_s21, 64 }
 0x206   : > { %v4512_v11 = vpop.permute.xlu0 %932  ;;  %v596_v32 = vsel %vm414_vm0, %v593_v30, %v595_v47  ;;  %v1523_v40 = vsel %vm1502_vm7, %v1490_v62, %v1027_v0  ;;  %v599_v0 = vsel %vm495_vm1, %v597_v4, %v598_v34  ;;  %v5215_v34 = vld [vmem:[#allocation53_spill] sm:$0xff] }
 0x207   : > { %1330 = vrot.lane.b32.xlu1 %v586_v24, %s2850_s15 }
 0x208   : > { %1236 = vrot.lane.b32.xlu0 %v583_v1, %s2849_s14 }
 0x209   : > { %v4519_v10 = vpop.permute.xlu1 %1028 }
 0x20a   : > { %v1313_v18 = vpop.permute.xlu0 %1312 }
 0x20b   : > { %v1621_v61 = vsel %vm1601_vm10, %v1588_v20, %v1313_v18  ;;  %1046 = vrot.lane.b32.xlu1 %v586_v24, %s2847_s16  ;;  %v2763_v18 = vld [vmem:[%s2948_s9 + $0xf8] sm:$0xff] }
 0x20c   : > { %952 = vrot.lane.b32.xlu0 %v583_v1, %s2846_s13  ;;  %2640 = vmatmul.mubr.msk.f32.gmra.mxu1 %vm1639_vm11, %v1621_v61  ;;  %v5213_v61 = vld [vmem:[#allocation50_spill] sm:$0xff] }
 0x20d   : > { %v4527_v51 = vpop.permute.xlu1 %838 }
 0x20e   : > { %v1123_v5 = vpop.permute.xlu0 %1122 }
 0x20f   : > { %1048 = vrot.lane.b32.xlu1 %v588_v50, %s2847_s16  ;;  %v1556_v44 = vsel %vm1535_vm8, %v1523_v40, %v1123_v5 }
 0x210   : > { %1332 = vrot.lane.b32.xlu0 %v588_v50, %s2850_s15  ;;  %v1392_v50 = vsel %vm1370_vm3, %v2763_v18, %v5213_v61  ;;  %v5218_v18 = vld [vmem:[#allocation9_spill] sm:$0xff] }
 0x211   : > { %v1219_v54 = vpop.permute.xlu1 %1218 }
 0x212   : > { %v1125_v6 = vpop.permute.xlu0 %1124  ;;  %v1589_v27 = vsel %vm1568_vm9, %v1556_v44, %v1219_v54 }
 0x213   : > { %1144 = vrot.lane.b32.xlu1 %v364_v58, %s2848_s8  ;;  %v2614_v38 = vpop.f32.mrf.mxu0  ;;  %v5214_v58 = vld [vmem:[#allocation70_spill] sm:$0xff] }
 0x214   : > { %v2174_v28 = vrot.slane %v2614_v38, 7  ;;  %1142 = vrot.lane.b32.xlu0 %v363_v12, %s2848_s8  ;;  %v2035_v56 = vmul.f32 %v2614_v38, %v2614_v38  ;;  %v1966_v14 = vsel %vm255_vm4, %v2614_v38, 0.0  ;;  %v1425_v7 = vsel %vm255_vm4, %v1392_v50, %v5214_v58 }
 0x215   : > { %v4546_v15 = vpop.permute.xlu1 %934  ;;  %v1806_v31 = vpop.f32.mrf.mxu0  ;;  %v1458_v12 = vsel %vm1436_vm5, %v1425_v7, %v4491_v26 }
 0x216   : > { %v2285_v59 = vsel %vm2135_vm13, %v2174_v28, 0.0  ;;  %v1965_v22 = vsel %vm255_vm4, %v1806_v31, 0.0  ;;  %v4553_v13 = vpop.permute.xlu0 %840  ;;  %v2034_v33 = vmul.f32 %v1806_v31, %v1806_v31  ;;  %v2173_v24 = vrot.slane %v1806_v31, 7 }
 0x217   : > { %2515 = vst.msk [vmem:[%s4045_s23 + $0x28] sm:$0x3] %vm253_vm12, %v2285_v59  ;;  %v1967_v9 = vadd.f32 %v1966_v14, %v1965_v22  ;;  %1240 = vrot.lane.b32.xlu1 %v596_v32, %s2849_s14  ;;  %v2067_v1 = vsel %vm255_vm4, %v2035_v56, 0.0  ;;  %v1491_v47 = vsel %vm1469_vm6, %v1458_v12, %v4512_v11  ;;  %v2764_v11 = vld [vmem:[%s2948_s9 + $0x108] sm:$0xff]  ;;  %s4851_s9 = scalar_lea.vmem [#allocation2], %s2477_s6 }
 0x218   : > { %1238 = vrot.lane.b32.xlu0 %v594_v35, %s2849_s14  ;;  %v2066_v46 = vsel %vm255_vm4, %v2034_v33, 0.0  ;;  %v2175_v43 = vsel %vm2135_vm13, %v2173_v24, %v2174_v28  ;;  %v2269_v3 = vsel %vm2135_vm13, 0.0, %v2173_v24  ;;  %v1524_v52 = vsel %vm1502_vm7, %v1491_v47, %v4519_v10  ;;  %v5216_v28 = vld [vmem:[#allocation72_spill] sm:$0xff]  ;;  %254 = vst.msk [vmem:[%s4851_s9] sm:$0x3] %vm253_vm12, %v2851_v37  ;;  %s2374_s13 = sshll.u32 %s4851_s9, 4  ;;  %s2375_s13 = int_to_ptr.vmem [resolvable:$true] %s2374_s13 }
 0x219   : > { %v1315_v55 = vpop.permute.xlu1 %1314  ;;  %v2068_v21 = vadd.f32 %v2067_v1, %v2066_v46  ;;  %2513 = vst.msk [vmem:[%s4045_s23 + $0x18] sm:$0xff] %vm255_vm4, %v2269_v3  ;;  %2514 = vst.msk [vmem:[%s4045_s23 + $0x20] sm:$0xff] %vm255_vm4, %v2175_v43  ;;  %v1557_v63 = vsel %vm1535_vm8, %v1524_v52, %v1125_v6  ;;  %v1393_v10 = vsel %vm1370_vm3, %v2764_v11, %v5215_v34  ;;  %s2765_s8 = scalar_lea.vmem %s2375_s13, 32  ;;  %p2772_p1 = scmp.lt.s32.totalorder %s2375_s13, %s2770_s21 }
 0x21a   : > { %v1622_v23 = vsel %vm1601_vm10, %v1589_v27, %v1315_v55  ;;  %v1221_v20 = vpop.permute.xlu0 %1220  ;;  %v1426_v4 = vsel %vm255_vm4, %v1393_v10, %v5216_v28  ;;  %p2766_p12 = scmp.ne.s32.totalorder %s2375_s13, %s2765_s8  ;;  %p2773_p2 = scmp.lt.s32.totalorder %s2771_s11, %s2765_s8 }
 0x21b   : > { %1336 = vrot.lane.b32.xlu1 %v601_v8, %s2850_s15  ;;  %2642 = vmatprep.mubr.msk.f32.mxu1 %vm1639_vm11, %v1622_v23  ;;  %v1590_v54 = vsel %vm1568_vm9, %v1557_v63, %v1221_v20  ;;  %v1459_v14 = vsel %vm1436_vm5, %v1426_v4, %v4527_v51 }
 0x21c   : > { %1334 = vrot.lane.b32.xlu0 %v599_v0, %s2850_s15  ;;  %v1492_v8 = vsel %vm1469_vm6, %v1459_v14, %v4546_v15  ;;  %v5220_v14 = vld [vmem:[#allocation73_spill] sm:$0xff]  ;;  %p2767_p13 = pnand %p2766_p12, %p2923_p4  ;;  %p2774_p3 = por %p2773_p2, %p2772_p1 }
 0x21d   : > { %v1031_v5 = vpop.permute.xlu1 %1030 }
 0x21e   : > { %v937_v30 = vpop.permute.xlu0 %936  ;;  %v1525_v51 = vsel %vm1502_vm7, %v1492_v8, %v1031_v5  ;;  %p2768_p0 = pneg %p2767_p13 }
 0x220   : > { %p2775_p5 = pnand %p2774_p3, %p2768_p0 }
 0x221   : > { %v1033_v19 = vpop.permute.xlu1 %1032 }
 0x222   : > { %v1317_v49 = vpop.permute.xlu0 %1316 }
 0x223   : > { %v1623_v17 = vsel %vm1601_vm10, %v1590_v54, %v1317_v49 }
 0x224   : > { %2643 = vmatmul.mubr.msk.f32.gmra.mxu1 %vm1639_vm11, %v1623_v17 }
 0x225   : > { %v4590_v57 = vpop.permute.xlu1 %842 }
 0x226   : > { %v1127_v26 = vpop.permute.xlu0 %1126 }
 0x227   : > { %v2617_v2 = vpop.f32.mrf.mxu0  ;;  %v1558_v46 = vsel %vm1535_vm8, %v1525_v51, %v1127_v26 }
 0x228   : > { %v2177_v53 = vrot.slane %v2617_v2, 7  ;;  %v2037_v56 = vmul.f32 %v2617_v2, %v2617_v2  ;;  %v1970_v59 = vsel %vm255_vm4, %v2617_v2, 0.0 }
 0x229   : > { %v1223_v38 = vpop.permute.xlu1 %1222  ;;  %v1816_v6 = vpop.f32.mrf.mxu0 }
 0x22a   : > { %v2286_v32 = vsel %vm2135_vm13, %v2177_v53, 0.0  ;;  %v1968_v25 = vsel %vm255_vm4, %v1816_v6, 0.0  ;;  %v1129_v62 = vpop.permute.xlu0 %1128  ;;  %v2036_v35 = vmul.f32 %v1816_v6, %v1816_v6  ;;  %v2176_v40 = vrot.slane %v1816_v6, 7 }
 0x22b   : > { %2518 = vst.msk [vmem:[%s4045_s23 + $0x40] sm:$0x3] %vm253_vm12, %v2286_v32  ;;  %v1969_v31 = vadd.f32 %v1968_v25, %v1967_v9  ;;  %v2071_v1 = vsel %vm255_vm4, %v2037_v56, 0.0  ;;  %v1591_v3 = vsel %vm1568_vm9, %v1558_v46, %v1223_v38 }
 0x22c   : > { %v2069_v22 = vsel %vm255_vm4, %v2036_v35, 0.0  ;;  %v2178_v44 = vsel %vm2135_vm13, %v2176_v40, %v2177_v53  ;;  %v2270_v33 = vsel %vm2135_vm13, 0.0, %v2176_v40 }
 0x22d   : > { %v939_v24 = vpop.permute.xlu1 %938  ;;  %v1971_v27 = vadd.f32 %v1970_v59, %v1969_v31  ;;  %v2070_v0 = vadd.f32 %v2069_v22, %v2068_v21  ;;  %2516 = vst.msk [vmem:[%s4045_s23 + $0x30] sm:$0xff] %vm255_vm4, %v2270_v33  ;;  %2517 = vst.msk [vmem:[%s4045_s23 + $0x38] sm:$0xff] %vm255_vm4, %v2178_v44  ;;  %v5217_v21 = vld [vmem:[#allocation52_spill] sm:$0xff]  ;;  %v5219_v31 = vld [vmem:[#allocation55_spill] sm:$0xff] }
 0x22e   : > { %v4613_v9 = vpop.permute.xlu0 %844  ;;  %v1394_v20 = vsel %vm1370_vm3, %v4012_v36, %v5217_v21  ;;  %v1395_v35 = vsel %vm1370_vm3, %v4234_v45, %v5219_v31 }
 0x22f   : > { %v2072_v43 = vadd.f32 %v2071_v1, %v2070_v0  ;;  %v1427_v61 = vsel %vm255_vm4, %v1394_v20, %v5218_v18  ;;  %v1428_v59 = vsel %vm255_vm4, %v1395_v35, %v5220_v14 }
 0x230   : > { %v1460_v58 = vsel %vm1436_vm5, %v1427_v61, %v4553_v13  ;;  %v1461_v44 = vsel %vm1436_vm5, %v1428_v59, %v4590_v57 }
 0x231   : > { %v1319_v55 = vpop.permute.xlu1 %1318  ;;  %v1493_v5 = vsel %vm1469_vm6, %v1460_v58, %v937_v30 }
 0x232   : > { %v1624_v23 = vsel %vm1601_vm10, %v1591_v3, %v1319_v55  ;;  %v1225_v15 = vpop.permute.xlu0 %1224  ;;  %v1526_v12 = vsel %vm1502_vm7, %v1493_v5, %v1033_v19  ;;  %v5221_v3 = vld [vmem:[#allocation54_spill] sm:$0xff]  ;;  %v5222_v55 = vld [vmem:[#allocation8_spill] sm:$0xff] }
 0x233   : > { %2645 = vmatprep.mubr.msk.f32.mxu1 %vm1639_vm11, %v1624_v23  ;;  %v1559_v47 = vsel %vm1535_vm8, %v1526_v12, %v1129_v62  ;;  %v1396_v57 = vsel %vm1370_vm3, %v4258_v60, %v5221_v3 }
 0x234   : > { %v1592_v63 = vsel %vm1568_vm9, %v1559_v47, %v1225_v15 }
 0x235   : > { %v1035_v50 = vpop.permute.xlu1 %1034 }
 0x236   : > { %v941_v7 = vpop.permute.xlu0 %940 }
 0x239   : > { %v1037_v52 = vpop.permute.xlu1 %1036 }
 0x23a   : > { %v1321_v54 = vpop.permute.xlu0 %1320 }
 0x23b   : > { %v1625_v36 = vsel %vm1601_vm10, %v1592_v63, %v1321_v54  ;;  %v2620_v49 = vpop.f32.mrf.mxu0 }
 0x23c   : > { %v2180_v17 = vrot.slane %v2620_v49, 7  ;;  %2646 = vmatmul.mubr.msk.f32.gmra.mxu1 %vm1639_vm11, %v1625_v36  ;;  %v2039_v53 = vmul.f32 %v2620_v49, %v2620_v49  ;;  %v1974_v38 = vsel %vm255_vm4, %v2620_v49, 0.0 }
 0x23d   : > { %v4634_v26 = vpop.permute.xlu1 %846  ;;  %v1826_v13 = vpop.f32.mrf.mxu0 }
 0x23e   : > { %v2287_v30 = vsel %vm2135_vm13, %v2180_v17, 0.0  ;;  %v1972_v19 = vsel %vm255_vm4, %v1826_v13, 0.0  ;;  %v1131_v2 = vpop.permute.xlu0 %1130  ;;  %v2038_v34 = vmul.f32 %v1826_v13, %v1826_v13  ;;  %v2179_v10 = vrot.slane %v1826_v13, 7 }
 0x23f   : > { %2521 = vst.msk [vmem:[%s4045_s23 + $0x58] sm:$0x3] %vm253_vm12, %v2287_v30  ;;  %v1973_v11 = vadd.f32 %v1972_v19, %v1971_v27  ;;  %v2075_v40 = vsel %vm255_vm4, %v2039_v53, 0.0  ;;  %v1494_v27 = vsel %vm1469_vm6, %v1461_v44, %v939_v24  ;;  %v1429_v24 = vsel %vm255_vm4, %v1396_v57, %v5222_v55 }
 0x240   : > { %v2073_v6 = vsel %vm255_vm4, %v2038_v34, 0.0  ;;  %v2181_v28 = vsel %vm2135_vm13, %v2179_v10, %v2180_v17  ;;  %v2271_v4 = vsel %vm2135_vm13, 0.0, %v2179_v10  ;;  %v1527_v0 = vsel %vm1502_vm7, %v1494_v27, %v1035_v50  ;;  %v5225_v27 = vld [vmem:[#allocation56_spill] sm:$0xff] }
 0x241   : > { %v1227_v32 = vpop.permute.xlu1 %1226  ;;  %v1975_v25 = vadd.f32 %v1974_v38, %v1973_v11  ;;  %v2074_v62 = vadd.f32 %v2073_v6, %v2072_v43  ;;  %2519 = vst.msk [vmem:[%s4045_s23 + $0x48] sm:$0xff] %vm255_vm4, %v2271_v4  ;;  %2520 = vst.msk [vmem:[%s4045_s23 + $0x50] sm:$0xff] %vm255_vm4, %v2181_v28  ;;  %v1560_v51 = vsel %vm1535_vm8, %v1527_v0, %v1131_v2  ;;  %v5223_v4 = vld [vmem:[#allocation57_spill] sm:$0xff] }
 0x242   : > { %v1133_v56 = vpop.permute.xlu0 %1132  ;;  %v1593_v1 = vsel %vm1568_vm9, %v1560_v51, %v1227_v32  ;;  %v1462_v15 = vsel %vm1436_vm5, %v1429_v24, %v4613_v9  ;;  %v1397_v32 = vsel %vm1370_vm3, %v4304_v48, %v5223_v4  ;;  %v1398_v48 = vsel %vm1370_vm3, %v4318_v39, %v5225_v27  ;;  %v5226_v51 = vld [vmem:[#allocation74_spill] sm:$0xff] }
 0x243   : > { %v2076_v22 = vadd.f32 %v2075_v40, %v2074_v62  ;;  %v1495_v20 = vsel %vm1469_vm6, %v1462_v15, %v941_v7 }
 0x244   : > { %v1528_v61 = vsel %vm1502_vm7, %v1495_v20, %v1037_v52 }
 0x245   : > { %v943_v33 = vpop.permute.xlu1 %942  ;;  %v1561_v58 = vsel %vm1535_vm8, %v1528_v61, %v1133_v56 }
 0x246   : > { %v849_v8 = vpop.permute.xlu0 %848 }
 0x249   : > { %v1323_v45 = vpop.permute.xlu1 %1322 }
 0x24a   : > { %v1626_v46 = vsel %vm1601_vm10, %v1593_v1, %v1323_v45  ;;  %v1229_v43 = vpop.permute.xlu0 %1228 }
 0x24b   : > { %2648 = vmatprep.mubr.msk.f32.mxu1 %vm1639_vm11, %v1626_v46  ;;  %v1594_v60 = vsel %vm1568_vm9, %v1561_v58, %v1229_v43 }
 0x24d   : > { %v1039_v23 = vpop.permute.xlu1 %1038 }
 0x24e   : > { %v945_v21 = vpop.permute.xlu0 %944 }
 0x24f   : > { %v2623_v18 = vpop.f32.mrf.mxu0 }
 0x250   : > { %v2183_v50 = vrot.slane %v2623_v18, 7  ;;  %v2041_v47 = vmul.f32 %v2623_v18, %v2623_v18  ;;  %v1978_v17 = vsel %vm255_vm4, %v2623_v18, 0.0 }
 0x251   : > { %v1041_v5 = vpop.permute.xlu1 %1040  ;;  %v1836_v12 = vpop.f32.mrf.mxu0 }
 0x252   : > { %v2288_v63 = vsel %vm2135_vm13, %v2183_v50, 0.0  ;;  %v1976_v54 = vsel %vm255_vm4, %v1836_v12, 0.0  ;;  %v1325_v9 = vpop.permute.xlu0 %1324  ;;  %v2040_v36 = vmul.f32 %v1836_v12, %v1836_v12  ;;  %v2182_v52 = vrot.slane %v1836_v12, 7 }
 0x253   : > { %2524 = vst.msk [vmem:[%s4045_s23 + $0x70] sm:$0x3] %vm253_vm12, %v2288_v63  ;;  %v1977_v7 = vadd.f32 %v1976_v54, %v1975_v25  ;;  %v1627_v49 = vsel %vm1601_vm10, %v1594_v60, %v1325_v9  ;;  %v2079_v10 = vsel %vm255_vm4, %v2041_v47, 0.0  ;;  %v5224_v25 = vld [vmem:[#allocation75_spill] sm:$0xff] }
 0x254   : > { %2649 = vmatmul.mubr.msk.f32.gmra.mxu1 %vm1639_vm11, %v1627_v49  ;;  %v2077_v13 = vsel %vm255_vm4, %v2040_v36, 0.0  ;;  %v2184_v30 = vsel %vm2135_vm13, %v2182_v52, %v2183_v50  ;;  %v2272_v19 = vsel %vm2135_vm13, 0.0, %v2182_v52  ;;  %v1430_v62 = vsel %vm255_vm4, %v1397_v32, %v5224_v25 }
 0x255   : > { %v4683_v2 = vpop.permute.xlu1 %850  ;;  %v1979_v53 = vadd.f32 %v1978_v17, %v1977_v7  ;;  %v2078_v11 = vadd.f32 %v2077_v13, %v2076_v22  ;;  %2522 = vst.msk [vmem:[%s4045_s23 + $0x60] sm:$0xff] %vm255_vm4, %v2272_v19  ;;  %2523 = vst.msk [vmem:[%s4045_s23 + $0x68] sm:$0xff] %vm255_vm4, %v2184_v30  ;;  %v1463_v56 = vsel %vm1436_vm5, %v1430_v62, %v4634_v26  ;;  %v5227_v30 = vld [vmem:[#allocation59_spill] sm:$0xff] }
 0x256   : > { %v1135_v34 = vpop.permute.xlu0 %1134  ;;  %v1496_v35 = vsel %vm1469_vm6, %v1463_v56, %v943_v33  ;;  %v1431_v33 = vsel %vm255_vm4, %v1398_v48, %v5226_v51  ;;  %v1399_v19 = vsel %vm1370_vm3, %v4364_v29, %v5227_v30 }
 0x257   : > { %v2080_v38 = vadd.f32 %v2079_v10, %v2078_v11  ;;  %v1529_v14 = vsel %vm1502_vm7, %v1496_v35, %v1039_v23  ;;  %v1464_v45 = vsel %vm1436_vm5, %v1431_v33, %v849_v8  ;;  %v5229_v35 = vld [vmem:[#allocation58_spill] sm:$0xff] }
 0x258   : > { %v1562_v59 = vsel %vm1535_vm8, %v1529_v14, %v1135_v34  ;;  %v1497_v43 = vsel %vm1469_vm6, %v1464_v45, %v945_v21  ;;  %v1400_v14 = vsel %vm1370_vm3, %v4374_v42, %v5229_v35 }
 0x259   : > { %v1231_v6 = vpop.permute.xlu1 %1230  ;;  %v1530_v55 = vsel %vm1502_vm7, %v1497_v43, %v1041_v5 }
 0x25a   : > { %v1137_v28 = vpop.permute.xlu0 %1136  ;;  %v1595_v22 = vsel %vm1568_vm9, %v1562_v59, %v1231_v6 }
 0x25b   : > { %v1563_v21 = vsel %vm1535_vm8, %v1530_v55, %v1137_v28 }
 0x25d   : > { %v947_v31 = vpop.permute.xlu1 %946 }
 0x25e   : > { %v4698_v40 = vpop.permute.xlu0 %852 }
 0x261   : > { %v1327_v44 = vpop.permute.xlu1 %1326 }
 0x262   : > { %v1628_v0 = vsel %vm1601_vm10, %v1595_v22, %v1327_v44  ;;  %v1233_v26 = vpop.permute.xlu0 %1232 }
 0x263   : > { %v2626_v1 = vpop.f32.mrf.mxu0  ;;  %2651 = vmatprep.mubr.msk.f32.mxu1 %vm1639_vm11, %v1628_v0  ;;  %v1596_v47 = vsel %vm1568_vm9, %v1563_v21, %v1233_v26  ;;  %v5230_v26 = vld [vmem:[#allocation76_spill] sm:$0xff] }
 0x264   : > { %v2186_v46 = vrot.slane %v2626_v1, 7  ;;  %v2043_v15 = vmul.f32 %v2626_v1, %v2626_v1  ;;  %v1982_v61 = vsel %vm255_vm4, %v2626_v1, 0.0  ;;  %v1433_v42 = vsel %vm255_vm4, %v1400_v14, %v5230_v26 }
 0x265   : > { %v1043_v3 = vpop.permute.xlu1 %1042  ;;  %v1846_v57 = vpop.f32.mrf.mxu0 }
 0x266   : > { %v2289_v39 = vsel %vm2135_vm13, %v2186_v46, 0.0  ;;  %v1980_v24 = vsel %vm255_vm4, %v1846_v57, 0.0  ;;  %v4715_v23 = vpop.permute.xlu0 %948  ;;  %v2042_v8 = vmul.f32 %v1846_v57, %v1846_v57  ;;  %v2185_v18 = vrot.slane %v1846_v57, 7 }
 0x267   : > { %2527 = vst.msk [vmem:[%s4045_s23 + $0x88] sm:$0x3] %vm253_vm12, %v2289_v39  ;;  %v1981_v20 = vadd.f32 %v1980_v24, %v1979_v53  ;;  %v2083_v9 = vsel %vm255_vm4, %v2043_v15, 0.0  ;;  %v5228_v53 = vld [vmem:[#allocation77_spill] sm:$0xff] }
 0x268   : > { %v2081_v50 = vsel %vm255_vm4, %v2042_v8, 0.0  ;;  %v2187_v58 = vsel %vm2135_vm13, %v2185_v18, %v2186_v46  ;;  %v2273_v5 = vsel %vm2135_vm13, 0.0, %v2185_v18  ;;  %v1432_v11 = vsel %vm255_vm4, %v1399_v19, %v5228_v53 }
 0x269   : > { %v1045_v12 = vpop.permute.xlu1 %1044  ;;  %v1983_v60 = vadd.f32 %v1982_v61, %v1981_v20  ;;  %v2082_v63 = vadd.f32 %v2081_v50, %v2080_v38  ;;  %2525 = vst.msk [vmem:[%s4045_s23 + $0x78] sm:$0xff] %vm255_vm4, %v2273_v5  ;;  %2526 = vst.msk [vmem:[%s4045_s23 + $0x80] sm:$0xff] %vm255_vm4, %v2187_v58  ;;  %v1465_v34 = vsel %vm1436_vm5, %v1432_v11, %v4683_v2  ;;  %v5231_v5 = vld [vmem:[#allocation60_spill] sm:$0xff] }
 0x26a   : > { %v1329_v54 = vpop.permute.xlu0 %1328  ;;  %v1498_v38 = vsel %vm1469_vm6, %v1465_v34, %v947_v31 }
 0x26b   : > { %v1629_v7 = vsel %vm1601_vm10, %v1596_v47, %v1329_v54  ;;  %v2084_v36 = vadd.f32 %v2083_v9, %v2082_v63  ;;  %v1531_v28 = vsel %vm1502_vm7, %v1498_v38, %v1043_v3  ;;  %v1466_v3 = vsel %vm1436_vm5, %v1433_v42, %v4698_v40  ;;  %v5233_v47 = vld [vmem:[#allocation78_spill] sm:$0xff]  ;;  %v5234_v54 = vld [vmem:[#allocation79_spill] sm:$0xff] }
 0x26c   : > { %2652 = vmatmul.mubr.msk.f32.gmra.mxu1 %vm1639_vm11, %v1629_v7  ;;  %v1499_v39 = vsel %vm1469_vm6, %v1466_v3, %v4715_v23  ;;  %v1402_v23 = vsel %vm1370_vm3, %v4433_v16, %v5231_v5 }
 0x26d   : > { %v855_v52 = vpop.permute.xlu1 %854  ;;  %v1532_v15 = vsel %vm1502_vm7, %v1499_v39, %v1045_v12  ;;  %v1435_v63 = vsel %vm255_vm4, %v1402_v23, %v5233_v47 }
 0x26e   : > { %v1139_v49 = vpop.permute.xlu0 %1138 }
 0x26f   : > { %v1564_v32 = vsel %vm1535_vm8, %v1531_v28, %v1139_v49 }
 0x271   : > { %v1235_v17 = vpop.permute.xlu1 %1234 }
 0x272   : > { %v1141_v13 = vpop.permute.xlu0 %1140  ;;  %v1597_v62 = vsel %vm1568_vm9, %v1564_v32, %v1235_v17 }
 0x273   : > { %v1565_v8 = vsel %vm1535_vm8, %v1532_v15, %v1141_v13 }
 0x275   : > { %v951_v10 = vpop.permute.xlu1 %950 }
 0x276   : > { %v857_v6 = vpop.permute.xlu0 %856 }
 0x277   : > { %v2629_v4 = vpop.f32.mrf.mxu0 }
 0x278   : > { %v2189_v25 = vrot.slane %v2629_v4, 7  ;;  %v2045_v44 = vmul.f32 %v2629_v4, %v2629_v4  ;;  %v1986_v51 = vsel %vm255_vm4, %v2629_v4, 0.0 }
 0x279   : > { %v1331_v29 = vpop.permute.xlu1 %1330  ;;  %v1856_v56 = vpop.f32.mrf.mxu0 }
 0x27a   : > { %v2290_v2 = vsel %vm2135_vm13, %v2189_v25, 0.0  ;;  %v1630_v59 = vsel %vm1601_vm10, %v1597_v62, %v1331_v29  ;;  %v1984_v31 = vsel %vm255_vm4, %v1856_v56, 0.0  ;;  %v1237_v22 = vpop.permute.xlu0 %1236  ;;  %v2044_v48 = vmul.f32 %v1856_v56, %v1856_v56 }
 0x27b   : > { %2530 = vst.msk [vmem:[%s4045_s23 + $0xa0] sm:$0x3] %vm253_vm12, %v2290_v2  ;;  %v1985_v27 = vadd.f32 %v1984_v31, %v1983_v60  ;;  %v2188_v0 = vrot.slane %v1856_v56, 7  ;;  %2654 = vmatprep.mubr.msk.f32.mxu1 %vm1639_vm11, %v1630_v59  ;;  %v2087_v24 = vsel %vm255_vm4, %v2045_v44, 0.0  ;;  %v1598_v21 = vsel %vm1568_vm9, %v1565_v8, %v1237_v22  ;;  %v5232_v60 = vld [vmem:[#allocation61_spill] sm:$0xff] }
 0x27c   : > { %v2085_v33 = vsel %vm255_vm4, %v2044_v48, 0.0  ;;  %v1401_v12 = vsel %vm1370_vm3, %v4421_v41, %v5232_v60 }
 0x27d   : > { %v2190_v1 = vsel %vm2135_vm13, %v2188_v0, %v2189_v25  ;;  %v2274_v45 = vsel %vm2135_vm13, 0.0, %v2188_v0  ;;  %v1047_v46 = vpop.permute.xlu1 %1046  ;;  %v1987_v43 = vadd.f32 %v1986_v51, %v1985_v27  ;;  %v2086_v57 = vadd.f32 %v2085_v33, %v2084_v36 }
 0x27e   : > { %2528 = vst.msk [vmem:[%s4045_s23 + $0x90] sm:$0xff] %vm255_vm4, %v2274_v45  ;;  %2529 = vst.msk [vmem:[%s4045_s23 + $0x98] sm:$0xff] %vm255_vm4, %v2190_v1  ;;  %v953_v55 = vpop.permute.xlu0 %952  ;;  %v1434_v9 = vsel %vm255_vm4, %v1401_v12, %v5234_v54  ;;  %v1468_v36 = vsel %vm1436_vm5, %v1435_v63, %v857_v6 }
 0x27f   : > { %v2088_v20 = vadd.f32 %v2087_v24, %v2086_v57  ;;  %v1467_v7 = vsel %vm1436_vm5, %v1434_v9, %v855_v52  ;;  %v1501_v13 = vsel %vm1469_vm6, %v1468_v36, %v953_v55 }
 0x280   : > { %v1500_v17 = vsel %vm1469_vm6, %v1467_v7, %v951_v10 }
 0x281   : > { %v1049_v18 = vpop.permute.xlu1 %1048  ;;  %v1533_v30 = vsel %vm1502_vm7, %v1500_v17, %v1047_v46 }
 0x282   : > { %v1333_v40 = vpop.permute.xlu0 %1332  ;;  %v1534_v41 = vsel %vm1502_vm7, %v1501_v13, %v1049_v18 }
 0x283   : > { %v1631_v61 = vsel %vm1601_vm10, %v1598_v21, %v1333_v40 }
 0x284   : > { %2655 = vmatmul.mubr.msk.f32.gmra.mxu1 %vm1639_vm11, %v1631_v61 }
 0x285   : > { %v1145_v50 = vpop.permute.xlu1 %1144 }
 0x286   : > { %v1143_v58 = vpop.permute.xlu0 %1142  ;;  %v1567_v53 = vsel %vm1535_vm8, %v1534_v41, %v1145_v50 }
 0x287   : > { %v1566_v11 = vsel %vm1535_vm8, %v1533_v30, %v1143_v58 }
 0x289   : > { %v1241_v49 = vpop.permute.xlu1 %1240 }
 0x28a   : > { %v1239_v16 = vpop.permute.xlu0 %1238  ;;  %v1600_v52 = vsel %vm1568_vm9, %v1567_v53, %v1241_v49 }
 0x28b   : > { %v2632_v19 = vpop.f32.mrf.mxu0  ;;  %v1599_v38 = vsel %vm1568_vm9, %v1566_v11, %v1239_v16 }
 0x28c   : > { %v2192_v34 = vrot.slane %v2632_v19, 7  ;;  %v2047_v28 = vmul.f32 %v2632_v19, %v2632_v19  ;;  %v1990_v2 = vsel %vm255_vm4, %v2632_v19, 0.0 }
 0x28d   : > { %v1337_v6 = vpop.permute.xlu1 %1336  ;;  %v1866_v10 = vpop.f32.mrf.mxu0 }
 0x28e   : > { %v2291_v4 = vsel %vm2135_vm13, %v2192_v34, 0.0  ;;  %v1633_v32 = vsel %vm1601_vm10, %v1600_v52, %v1337_v6  ;;  %v1988_v25 = vsel %vm255_vm4, %v1866_v10, 0.0  ;;  %v1335_v62 = vpop.permute.xlu0 %1334  ;;  %v2046_v56 = vmul.f32 %v1866_v10, %v1866_v10 }
 0x28f   : > { %2533 = vst.msk [vmem:[%s4045_s23 + $0xb8] sm:$0x3] %vm253_vm12, %v2291_v4  ;;  %v1989_v29 = vadd.f32 %v1988_v25, %v1987_v43  ;;  %v2191_v35 = vrot.slane %v1866_v10, 7  ;;  %v1632_v14 = vsel %vm1601_vm10, %v1599_v38, %v1335_v62  ;;  %v2091_v48 = vsel %vm255_vm4, %v2047_v28, 0.0 }
 0x290   : > { %2657 = vmatprep.mubr.msk.f32.mxu1 %vm1639_vm11, %v1632_v14  ;;  %v2089_v59 = vsel %vm255_vm4, %v2046_v56, 0.0 }
 0x291   : > { %v2193_v31 = vsel %vm2135_vm13, %v2191_v35, %v2192_v34  ;;  %v2275_v22 = vsel %vm2135_vm13, 0.0, %v2191_v35  ;;  %2658 = vmatmul.mubr.msk.f32.gmra.mxu1 %vm1639_vm11, %v1633_v32  ;;  %v1991_v44 = vadd.f32 %v1990_v2, %v1989_v29  ;;  %v2090_v27 = vadd.f32 %v2089_v59, %v2088_v20 }
 0x292   : > { %2531 = vst.msk [vmem:[%s4045_s23 + $0xa8] sm:$0xff] %vm255_vm4, %v2275_v22  ;;  %2532 = vst.msk [vmem:[%s4045_s23 + $0xb0] sm:$0xff] %vm255_vm4, %v2193_v31 }
 0x293   : > { %v2092_v0 = vadd.f32 %v2091_v48, %v2090_v27 }
 0x29f   : > { %v2635_v26 = vpop.f32.mrf.mxu0 }
 0x2a0   : > { %v2195_v42 = vrot.slane %v2635_v26, 7  ;;  %v2049_v33 = vmul.f32 %v2635_v26, %v2635_v26  ;;  %v1994_v57 = vsel %vm255_vm4, %v2635_v26, 0.0 }
 0x2a1   : > { %v1876_v51 = vpop.f32.mrf.mxu0 }
 0x2a2   : > { %v2292_v1 = vsel %vm2135_vm13, %v2195_v42, 0.0  ;;  %v1992_v45 = vsel %vm255_vm4, %v1876_v51, 0.0  ;;  %v2048_v46 = vmul.f32 %v1876_v51, %v1876_v51  ;;  %v2194_v3 = vrot.slane %v1876_v51, 7 }
 0x2a3   : > { %2536 = vst.msk [vmem:[%s4045_s23 + $0xd0] sm:$0x3] %vm253_vm12, %v2292_v1  ;;  %v1993_v43 = vadd.f32 %v1992_v45, %v1991_v44  ;;  %v2095_v8 = vsel %vm255_vm4, %v2049_v33, 0.0 }
 0x2a4   : > { %v2093_v55 = vsel %vm255_vm4, %v2048_v46, 0.0  ;;  %v2196_v15 = vsel %vm2135_vm13, %v2194_v3, %v2195_v42  ;;  %v2276_v20 = vsel %vm2135_vm13, 0.0, %v2194_v3 }
 0x2a5   : > { %v1995_v39 = vadd.f32 %v1994_v57, %v1993_v43  ;;  %v2094_v24 = vadd.f32 %v2093_v55, %v2092_v0  ;;  %2534 = vst.msk [vmem:[%s4045_s23 + $0xc0] sm:$0xff] %vm255_vm4, %v2276_v20  ;;  %2535 = vst.msk [vmem:[%s4045_s23 + $0xc8] sm:$0xff] %vm255_vm4, %v2196_v15 }
 0x2a7   : > { %v2096_v18 = vadd.f32 %v2095_v8, %v2094_v24 }
 0x2b3   : > { %v2638_v21 = vpop.f32.mrf.mxu1 }
 0x2b4   : > { %v2198_v40 = vrot.slane %v2638_v21, 7  ;;  %v2051_v50 = vmul.f32 %v2638_v21, %v2638_v21  ;;  %v1998_v47 = vsel %vm255_vm4, %v2638_v21, 0.0 }
 0x2b5   : > { %v1886_v61 = vpop.f32.mrf.mxu1 }
 0x2b6   : > { %v2293_v58 = vsel %vm2135_vm13, %v2198_v40, 0.0  ;;  %v1996_v5 = vsel %vm255_vm4, %v1886_v61, 0.0  ;;  %v2050_v23 = vmul.f32 %v1886_v61, %v1886_v61  ;;  %v2197_v12 = vrot.slane %v1886_v61, 7 }
 0x2b7   : > { %2539 = vst.msk [vmem:[%s4045_s23 + $0xe8] sm:$0x3] %vm253_vm12, %v2293_v58  ;;  %v1997_v60 = vadd.f32 %v1996_v5, %v1995_v39  ;;  %v2099_v49 = vsel %vm255_vm4, %v2051_v50, 0.0 }
 0x2b8   : > { %v2097_v63 = vsel %vm255_vm4, %v2050_v23, 0.0  ;;  %v2199_v9 = vsel %vm2135_vm13, %v2197_v12, %v2198_v40  ;;  %v2277_v7 = vsel %vm2135_vm13, 0.0, %v2197_v12 }
 0x2b9   : > { %v2098_v54 = vadd.f32 %v2097_v63, %v2096_v18  ;;  %v1999_v36 = vadd.f32 %v1998_v47, %v1997_v60  ;;  %2537 = vst.msk [vmem:[%s4045_s23 + $0xd8] sm:$0xff] %vm255_vm4, %v2277_v7  ;;  %2538 = vst.msk [vmem:[%s4045_s23 + $0xe0] sm:$0xff] %vm255_vm4, %v2199_v9 }
 0x2bb   : > { %v2100_v17 = vadd.f32 %v2099_v49, %v2098_v54 }
 0x2cc   : > { %v2641_v13 = vpop.f32.mrf.mxu1 }
 0x2cd   : > { %v2201_v16 = vrot.slane %v2641_v13, 7  ;;  %v2053_v41 = vmul.f32 %v2641_v13, %v2641_v13  ;;  %v2002_v38 = vsel %vm255_vm4, %v2641_v13, 0.0 }
 0x2ce   : > { %v1896_v30 = vpop.f32.mrf.mxu1 }
 0x2cf   : > { %v2294_v19 = vsel %vm2135_vm13, %v2201_v16, 0.0  ;;  %v2000_v53 = vsel %vm255_vm4, %v1896_v30, 0.0  ;;  %v2052_v11 = vmul.f32 %v1896_v30, %v1896_v30  ;;  %v2200_v52 = vrot.slane %v1896_v30, 7 }
 0x2d0   : > { %2542 = vst.msk [vmem:[%s4045_s23 + $0x100] sm:$0x3] %vm253_vm12, %v2294_v19  ;;  %v2001_v34 = vadd.f32 %v2000_v53, %v1999_v36  ;;  %v2103_v25 = vsel %vm255_vm4, %v2053_v41, 0.0 }
 0x2d1   : > { %v2101_v6 = vsel %vm255_vm4, %v2052_v11, 0.0  ;;  %v2202_v28 = vsel %vm2135_vm13, %v2200_v52, %v2201_v16  ;;  %v2278_v4 = vsel %vm2135_vm13, 0.0, %v2200_v52 }
 0x2d2   : > { %v2102_v10 = vadd.f32 %v2101_v6, %v2100_v17  ;;  %v2003_v32 = vadd.f32 %v2002_v38, %v2001_v34  ;;  %2540 = vst.msk [vmem:[%s4045_s23 + $0xf0] sm:$0xff] %vm255_vm4, %v2278_v4  ;;  %2541 = vst.msk [vmem:[%s4045_s23 + $0xf8] sm:$0xff] %vm255_vm4, %v2202_v28 }
 0x2d4   : > { %v2104_v62 = vadd.f32 %v2103_v25, %v2102_v10 }
 0x2e4   : > { %v2644_v29 = vpop.f32.mrf.mxu1 }
 0x2e5   : > { %v2204_v56 = vrot.slane %v2644_v29, 7  ;;  %v2055_v14 = vmul.f32 %v2644_v29, %v2644_v29  ;;  %v2006_v27 = vsel %vm255_vm4, %v2644_v29, 0.0 }
 0x2e6   : > { %v1906_v35 = vpop.f32.mrf.mxu1 }
 0x2e7   : > { %v2295_v2 = vsel %vm2135_vm13, %v2204_v56, 0.0  ;;  %v2004_v59 = vsel %vm255_vm4, %v1906_v35, 0.0  ;;  %v2054_v31 = vmul.f32 %v1906_v35, %v1906_v35  ;;  %v2203_v44 = vrot.slane %v1906_v35, 7 }
 0x2e8   : > { %2545 = vst.msk [vmem:[%s4045_s23 + $0x118] sm:$0x3] %vm253_vm12, %v2295_v2  ;;  %v2005_v22 = vadd.f32 %v2004_v59, %v2003_v32  ;;  %v2107_v51 = vsel %vm255_vm4, %v2055_v14, 0.0 }
 0x2e9   : > { %v2105_v48 = vsel %vm255_vm4, %v2054_v31, 0.0  ;;  %v2205_v0 = vsel %vm2135_vm13, %v2203_v44, %v2204_v56  ;;  %v2279_v26 = vsel %vm2135_vm13, 0.0, %v2203_v44 }
 0x2ea   : > { %v2106_v37 = vadd.f32 %v2105_v48, %v2104_v62  ;;  %v2007_v42 = vadd.f32 %v2006_v27, %v2005_v22  ;;  %2543 = vst.msk [vmem:[%s4045_s23 + $0x108] sm:$0xff] %vm255_vm4, %v2279_v26  ;;  %2544 = vst.msk [vmem:[%s4045_s23 + $0x110] sm:$0xff] %vm255_vm4, %v2205_v0 }
 0x2ec   : > { %v2108_v33 = vadd.f32 %v2107_v51, %v2106_v37 }
 0x2fc   : > { %v2647_v1 = vpop.f32.mrf.mxu1 }
 0x2fd   : > { %v2207_v45 = vrot.slane %v2647_v1, 7  ;;  %v2057_v43 = vmul.f32 %v2647_v1, %v2647_v1  ;;  %v2010_v15 = vsel %vm255_vm4, %v2647_v1, 0.0 }
 0x2fe   : > { %v1916_v46 = vpop.f32.mrf.mxu1 }
 0x2ff   : > { %v2296_v3 = vsel %vm2135_vm13, %v2207_v45, 0.0  ;;  %v2008_v57 = vsel %vm255_vm4, %v1916_v46, 0.0  ;;  %v2056_v55 = vmul.f32 %v1916_v46, %v1916_v46  ;;  %v2206_v24 = vrot.slane %v1916_v46, 7 }
 0x300   : > { %2548 = vst.msk [vmem:[%s4045_s23 + $0x130] sm:$0x3] %vm253_vm12, %v2296_v3  ;;  %v2009_v39 = vadd.f32 %v2008_v57, %v2007_v42  ;;  %v2111_v61 = vsel %vm255_vm4, %v2057_v43, 0.0 }
 0x301   : > { %v2109_v20 = vsel %vm255_vm4, %v2056_v55, 0.0  ;;  %v2208_v18 = vsel %vm2135_vm13, %v2206_v24, %v2207_v45  ;;  %v2280_v21 = vsel %vm2135_vm13, 0.0, %v2206_v24 }
 0x302   : > { %v2110_v8 = vadd.f32 %v2109_v20, %v2108_v33  ;;  %v2011_v40 = vadd.f32 %v2010_v15, %v2009_v39  ;;  %2546 = vst.msk [vmem:[%s4045_s23 + $0x120] sm:$0xff] %vm255_vm4, %v2280_v21  ;;  %2547 = vst.msk [vmem:[%s4045_s23 + $0x128] sm:$0xff] %vm255_vm4, %v2208_v18 }
 0x304   : > { %v2112_v50 = vadd.f32 %v2111_v61, %v2110_v8 }
 0x314   : > { %v2650_v58 = vpop.f32.mrf.mxu1 }
 0x315   : > { %v2210_v5 = vrot.slane %v2650_v58, 7  ;;  %v2059_v53 = vmul.f32 %v2650_v58, %v2650_v58  ;;  %v2014_v6 = vsel %vm255_vm4, %v2650_v58, 0.0 }
 0x316   : > { %v1926_v23 = vpop.f32.mrf.mxu1 }
 0x317   : > { %v2297_v60 = vsel %vm2135_vm13, %v2210_v5, 0.0  ;;  %v2209_v12 = vrot.slane %v1926_v23, 7  ;;  %v2058_v16 = vmul.f32 %v1926_v23, %v1926_v23  ;;  %v2012_v30 = vsel %vm255_vm4, %v1926_v23, 0.0 }
 0x318   : > { %2551 = vst.msk [vmem:[%s4045_s23 + $0x148] sm:$0x3] %vm253_vm12, %v2297_v60  ;;  %v2013_v19 = vadd.f32 %v2012_v30, %v2011_v40  ;;  %v2115_v25 = vsel %vm255_vm4, %v2059_v53, 0.0 }
 0x319   : > { %v2211_v47 = vsel %vm2135_vm13, %v2209_v12, %v2210_v5  ;;  %v2281_v63 = vsel %vm2135_vm13, 0.0, %v2209_v12  ;;  %v2113_v41 = vsel %vm255_vm4, %v2058_v16, 0.0 }
 0x31a   : > { %2549 = vst.msk [vmem:[%s4045_s23 + $0x138] sm:$0xff] %vm255_vm4, %v2281_v63  ;;  %2550 = vst.msk [vmem:[%s4045_s23 + $0x140] sm:$0xff] %vm255_vm4, %v2211_v47  ;;  %v2114_v52 = vadd.f32 %v2113_v41, %v2112_v50  ;;  %v2015_v4 = vadd.f32 %v2014_v6, %v2013_v19  ;;  %v2137_v41 = vld [vmem:[%s4851_s9] sm:$0x3] }
 0x31c   : > { %v2116_v35 = vadd.f32 %v2115_v25, %v2114_v52 }
 0x32c   : > { %v2653_v54 = vpop.f32.mrf.mxu1 }
 0x32d   : > { %v2213_v9 = vrot.slane %v2653_v54, 7  ;;  %v2061_v14 = vmul.f32 %v2653_v54, %v2653_v54  ;;  %v2018_v44 = vsel %vm255_vm4, %v2653_v54, 0.0 }
 0x32e   : > { %v1936_v7 = vpop.f32.mrf.mxu1 }
 0x32f   : > { %v2298_v36 = vsel %vm2135_vm13, %v2213_v9, 0.0  ;;  %v2212_v49 = vrot.slane %v1936_v7, 7  ;;  %v2060_v11 = vmul.f32 %v1936_v7, %v1936_v7  ;;  %v2016_v10 = vsel %vm255_vm4, %v1936_v7, 0.0 }
 0x330   : > { %2554 = vst.msk [vmem:[%s4045_s23 + $0x160] sm:$0x3] %vm253_vm12, %v2298_v36  ;;  %v2017_v56 = vadd.f32 %v2016_v10, %v2015_v4  ;;  %v2119_v37 = vsel %vm255_vm4, %v2061_v14, 0.0 }
 0x331   : > { %v2214_v17 = vsel %vm2135_vm13, %v2212_v49, %v2213_v9  ;;  %v2282_v13 = vsel %vm2135_vm13, 0.0, %v2212_v49  ;;  %v2117_v62 = vsel %vm255_vm4, %v2060_v11, 0.0 }
 0x332   : > { %2552 = vst.msk [vmem:[%s4045_s23 + $0x150] sm:$0xff] %vm255_vm4, %v2282_v13  ;;  %2553 = vst.msk [vmem:[%s4045_s23 + $0x158] sm:$0xff] %vm255_vm4, %v2214_v17  ;;  %v2118_v22 = vadd.f32 %v2117_v62, %v2116_v35  ;;  %v2019_v48 = vadd.f32 %v2018_v44, %v2017_v56 }
 0x334   : > { %v2120_v51 = vadd.f32 %v2119_v37, %v2118_v22 }
 0x344   : > { %v2656_v34 = vpop.f32.mrf.mxu1 }
 0x345   : > { %v2216_v38 = vrot.slane %v2656_v34, 7  ;;  %v2063_v26 = vmul.f32 %v2656_v34, %v2656_v34  ;;  %v2022_v45 = vsel %vm255_vm4, %v2656_v34, 0.0 }
 0x346   : > { %v1946_v28 = vpop.f32.mrf.mxu1 }
 0x347   : > { %v2299_v32 = vsel %vm2135_vm13, %v2216_v38, 0.0  ;;  %v2215_v29 = vrot.slane %v1946_v28, 7  ;;  %v2062_v2 = vmul.f32 %v1946_v28, %v1946_v28  ;;  %v2020_v27 = vsel %vm255_vm4, %v1946_v28, 0.0 }
 0x348   : > { %2557 = vst.msk [vmem:[%s4045_s23 + $0x178] sm:$0x3] %vm253_vm12, %v2299_v32  ;;  %v2021_v42 = vadd.f32 %v2020_v27, %v2019_v48  ;;  %v2123_v43 = vsel %vm255_vm4, %v2063_v26, 0.0 }
 0x349   : > { %v2217_v59 = vsel %vm2135_vm13, %v2215_v29, %v2216_v38  ;;  %v2283_v31 = vsel %vm2135_vm13, 0.0, %v2215_v29  ;;  %v2121_v0 = vsel %vm255_vm4, %v2062_v2, 0.0 }
 0x34a   : > { %2555 = vst.msk [vmem:[%s4045_s23 + $0x168] sm:$0xff] %vm255_vm4, %v2283_v31  ;;  %2556 = vst.msk [vmem:[%s4045_s23 + $0x170] sm:$0xff] %vm255_vm4, %v2217_v59  ;;  %v2122_v33 = vadd.f32 %v2121_v0, %v2120_v51  ;;  %v2023_v57 = vadd.f32 %v2022_v45, %v2021_v42 }
 0x34c   : > { %v2124_v8 = vadd.f32 %v2123_v43, %v2122_v33 }
 0x351   : > { %v2659_v1 = vpop.f32.mrf.mxu1 }
 0x352   : > { %v2219_v46 = vrot.slane %v2659_v1, 7  ;;  %v2065_v55 = vmul.f32 %v2659_v1, %v2659_v1  ;;  %v2026_v21 = vsel %vm255_vm4, %v2659_v1, 0.0 }
 0x353   : > { %v1956_v3 = vpop.f32.mrf.mxu1 }
 0x354   : > { %v2300_v39 = vsel %vm2135_vm13, %v2219_v46, 0.0  ;;  %v2024_v24 = vsel %vm255_vm4, %v1956_v3, 0.0  ;;  %v2064_v15 = vmul.f32 %v1956_v3, %v1956_v3  ;;  %v2218_v18 = vrot.slane %v1956_v3, 7 }
 0x355   : > { %2560 = vst.msk [vmem:[%s4045_s23 + $0x190] sm:$0x3] %vm253_vm12, %v2300_v39  ;;  %v2025_v20 = vadd.f32 %v2024_v24, %v2023_v57  ;;  %v2127_v23 = vsel %vm255_vm4, %v2065_v55, 0.0 }
 0x356   : > { %v2125_v40 = vsel %vm255_vm4, %v2064_v15, 0.0  ;;  %v2220_v58 = vsel %vm2135_vm13, %v2218_v18, %v2219_v46  ;;  %v2284_v5 = vsel %vm2135_vm13, 0.0, %v2218_v18 }
 0x357   : > { %v2027_v61 = vadd.f32 %v2026_v21, %v2025_v20  ;;  %v2126_v50 = vadd.f32 %v2125_v40, %v2124_v8  ;;  %2558 = vst.msk [vmem:[%s4045_s23 + $0x180] sm:$0xff] %vm255_vm4, %v2284_v5  ;;  %2559 = vst.msk [vmem:[%s4045_s23 + $0x188] sm:$0xff] %vm255_vm4, %v2220_v58 }
 0x359   : > { %v2028_v60 = vrot.slane %v2027_v61, 4  ;;  %v2128_v12 = vadd.f32 %v2127_v23, %v2126_v50 }
 0x35b   : > { %v2029_v47 = vadd.f32 %v2028_v60, %v2027_v61  ;;  %v2129_v63 = vrot.slane %v2128_v12, 4 }
 0x35d   : > { %v2030_v54 = vrot.slane %v2029_v47, 2  ;;  %v2130_v9 = vadd.f32 %v2129_v63, %v2128_v12 }
 0x35f   : > { %v2031_v7 = vadd.f32 %v2030_v54, %v2029_v47  ;;  %v2131_v36 = vrot.slane %v2130_v9, 2 }
 0x361   : > { %v2032_v49 = vrot.slane %v2031_v7, 1  ;;  %v2132_v17 = vadd.f32 %v2131_v36, %v2130_v9 }
 0x363   : > { %v2133_v13 = vrot.slane %v2132_v17, 1  ;;  %v2033_v16 = vadd.f32 %v2032_v49, %v2031_v7 }
 0x365   : > { %v2134_v30 = vadd.f32 %v2133_v13, %v2132_v17 }
 0x367   : > { %v2136_v19 = vsel %vm2135_vm13, %v2033_v16, %v2134_v30 }
 0x368   : > { %v2138_v53 = vadd.f32 %v2137_v41, %v2136_v19 }
 0x36a   : > { %2140 = vst.msk [vmem:[%s4851_s9] sm:$0x3] %vm253_vm12, %v2138_v53 }
 0x36b   : > { %2778 = shalt.err (!%p2775_p5)
}
 0x36c   : > { %s2779_s14 = scalar_lea.hbm %s2372_s27, 32  ;;  %s2783_s3 = scalar_lea.hbm %s4984_s5, 64 }
 0x36d   : > { %p2780_p6 = scmp.ne.s32.totalorder %s2372_s27, %s2779_s14  ;;  %p2784_p10 = scmp.lt.s32.totalorder %s2372_s27, %s4984_s5 }
 0x36e   : > { %p2785_p11 = scmp.lt.s32.totalorder %s2783_s3, %s2779_s14 }
 0x36f   : > { %p2781_p7 = pnand %p2780_p6, %p2923_p4 }
 0x370   : > { %p2786_p12 = por %p2785_p11, %p2784_p10 }
 0x371   : > { %p2782_p9 = pneg %p2781_p7 }
 0x373   : > { %p2787_p13 = pnand %p2786_p12, %p2782_p9 }
 0x375   : > { %2790 = shalt.err (!%p2787_p13)
}
 0x376   : > { %2671 = dma.vmem_to_hbm [thread:$0]  (%p2923_p4), %s2375_s13, 32, %s2372_s27, %s2358_s7  }
 0x377 PF: > { %p2677_p0 = scmp.ge.s32.totalorder %s2841_s22, 2  ;;  %s2394_s6 = sand.u32 1, %s2821_s18  }
 0x378   : > { %s2395_s9 = scalar_lea.sflag [#allocation3], %s2394_s6 }
 0x379   : > { %p2674_p1 = pnand %p2677_p0, %p2930_p8 }
 0x37b   : > { %p2675_p2 = pneg %p2674_p1 }
 0x37d   : > { %2816 = dma.done.wait (%p2675_p2), %s2395_s9, 32  }
 0x37e   : > { %2818 = vsyncadd (%p2675_p2), %s2395_s9, 4294967264  ;;  %s19_s22 = sadd.s32 1, %s2841_s22   ;;  %s5235_s18 = smov %s2825_s19 }
 0x37f   : > { %p16_p3 = scmp.ge.s32.totalorder %s19_s22, 4   ;;  %s5236_s19 = smov %s2829_s20 }
 0x380   : > { %s5237_s20 = smov %s2936_s29  ;;  %s5238_s21 = smov %s2837_s2 }
 0x381   : > { %s5239_s2 = smov %s5241_s24  ;;  %18 = sbr.rel (!%p16_p3) target bundleno = 4 (0x4), region = 89 }
 0x386   :  { %2400 = vsyncpa [#allocation3], 1 }
 0x387   :  { %2402 = vsyncpa [#allocation3 + $0x1], 1 }

</bundles_post_ra>
